<compile_context>
chip_gen: v5e
topology: v5e:2x2
jax: 0.10.0
libtpu: 0.0.40
codegen_flags: <defaults>
</compile_context>

<pallas_src>
import functools

import jax
import jax.numpy as jnp
from jax import lax
from jax.experimental import pallas as pl
from jax.experimental.pallas import tpu as pltpu

N_EMBD = 384
BLOCK_SIZE = 64   # max sequence length supported by the torch module's tril
DROPOUT = 0.1


def _mha_kernel(seed_ref, x_ref, wqkv_ref, wo_ref, bo_ref, o_ref, *,
                num_heads: int, head_size: int, training: bool,
                dropout_p: float):
    Bblk, T, C = x_ref.shape
    nh, hs = num_heads, head_size
    hd = nh * hs                       # == C for this module

    # (Bblk, T, C) -> (Bblk*T, C): merging leading dims is layout-free and
    # raises the matmul M-dim to Bblk*T rows.
    x2 = x_ref[...].reshape(Bblk * T, C).astype(jnp.bfloat16)

    # Fused Q/K/V projection: one lane-dense (Bblk*T,384)x(384,1152) matmul.
    # The 1/sqrt(hs) scale is already folded into the Q columns of wqkv.
    qkv = jnp.dot(x2, wqkv_ref[...], preferred_element_type=jnp.float32)
    qkv = qkv.reshape(Bblk, T, 3 * hd)

    # Training-mode dropout: seed once per step with a hashed (seed, step) and
    # draw all random bits in two 2-D draws (instead of 6 padded (T,T) draws).
    if training and dropout_p > 0.0:
        pltpu.prng_seed(seed_ref[0] * jnp.int32(-1640531527) + pl.program_id(0))
        attn_bits = pltpu.bitcast(
            pltpu.prng_random_bits((nh * Bblk * T, T)), jnp.uint32)
        out_bits = pltpu.bitcast(
            pltpu.prng_random_bits((Bblk * T, C)), jnp.uint32)
        thr = jnp.uint32(int(dropout_p * 4294967296.0))
        keep_scale = jnp.float32(1.0 / (1.0 - dropout_p))

    # Causal mask generated in-kernel (no tril buffer); broadcasts over Bblk.
    rows = lax.broadcasted_iota(jnp.int32, (T, T), 0)
    cols = lax.broadcasted_iota(jnp.int32, (T, T), 1)
    causal = (cols <= rows)[None]                      # (1, T, T)

    head_outs = []
    for h in range(nh):                                # nh is small & static
        q_h = qkv[:, :, h * hs:(h + 1) * hs].astype(jnp.bfloat16)
        k_h = qkv[:, :, hd + h * hs: hd + (h + 1) * hs].astype(jnp.bfloat16)
        v_h = qkv[:, :, 2 * hd + h * hs: 2 * hd + (h + 1) * hs].astype(jnp.bfloat16)

        # scores batched over the batch block (scale already in q via Wq)
        s = jnp.einsum('btd,bsd->bts', q_h, k_h,
                       preferred_element_type=jnp.float32)      # (Bblk, T, T)
        s = jnp.where(causal, s, -jnp.inf)

        # numerically-stable softmax over keys (f32, EUP reciprocal)
        m = jnp.max(s, axis=-1, keepdims=True)
        p = jnp.exp(s - m)
        l = jnp.sum(p, axis=-1, keepdims=True)
        wei = p * pl.reciprocal(l, approx=True)

        if training and dropout_p > 0.0:
            b_h = attn_bits[h * Bblk * T:(h + 1) * Bblk * T].reshape(Bblk, T, T)
            wei = jnp.where(b_h >= thr, wei * keep_scale, 0.0)

        head_outs.append(
            jnp.einsum('bts,bsd->btd', wei.astype(jnp.bfloat16), v_h,
                       preferred_element_type=jnp.float32))     # (Bblk, T, hs)

    # concat heads then ONE full-width output projection + bias
    o_all = jnp.concatenate(head_outs, axis=-1).reshape(Bblk * T, hd)
    y = jnp.dot(o_all.astype(jnp.bfloat16), wo_ref[...],
                preferred_element_type=jnp.float32) + bo_ref[...]

    if training and dropout_p > 0.0:
        y = jnp.where(out_bits >= thr, y * keep_scale, 0.0)

    o_ref[...] = y.reshape(Bblk, T, C).astype(o_ref.dtype)


def multi_head_attention(x, wq, wk, wv, wo, bo, *, training=False,
                         dropout_p=DROPOUT, seed=0, block_b=None):
    """x: (B, T, C); wq/wk/wv: (nh, C, hs); wo: (nh, hs, C); bo: (C,)."""
    B, T, C = x.shape
    nh, C_in, hs = wq.shape
    assert C_in == C and wk.shape == wq.shape and wv.shape == wq.shape
    assert wo.shape == (nh, hs, C) and bo.shape == (C,)
    assert T <= BLOCK_SIZE, "torch module's tril buffer only covers block_size"

    if block_b is None:
        # v7x: keep an even, >= 2-step parallel grid when B allows it (2 TCs);
        # otherwise one big block (v5e/v6e: fewest, largest steps).
        block_b = B if (B % 2) else max(1, B // 2)
    assert B % block_b == 0

    scale = hs ** -0.5
    # Pack weights lane-dense and fold the attention scale into the Q columns.
    # Layout: [Wq*scale | Wk | Wv], each (C, nh*hs) with head h at cols h*hs.
    wq_c = jnp.transpose(wq, (1, 0, 2)).reshape(C, nh * hs) * scale
    wk_c = jnp.transpose(wk, (1, 0, 2)).reshape(C, nh * hs)
    wv_c = jnp.transpose(wv, (1, 0, 2)).reshape(C, nh * hs)
    w_qkv = jnp.concatenate([wq_c, wk_c, wv_c], axis=1).astype(jnp.bfloat16)
    w_o = wo.reshape(nh * hs, C).astype(jnp.bfloat16)     # concat-of-heads rows
    bo_2d = bo.reshape(1, C).astype(jnp.float32)
    seed_arr = jnp.array([seed], dtype=jnp.int32)

    kernel = functools.partial(_mha_kernel, num_heads=nh, head_size=hs,
                               training=training, dropout_p=dropout_p)

    out = pl.pallas_call(
        kernel,
        out_shape=jax.ShapeDtypeStruct((B, T, C), x.dtype),
        grid_spec=pltpu.PrefetchScalarGridSpec(
            num_scalar_prefetch=1,
            grid=(B // block_b,),
            in_specs=[
                pl.BlockSpec((block_b, T, C), lambda b, *_: (b, 0, 0)),   # x
                pl.BlockSpec((C, 3 * nh * hs), lambda b, *_: (0, 0)),     # Wqkv
                pl.BlockSpec((nh * hs, C), lambda b, *_: (0, 0)),         # Wo
                pl.BlockSpec((1, C), lambda b, *_: (0, 0)),               # bias
            ],
            out_specs=pl.BlockSpec((block_b, T, C), lambda b, *_: (b, 0, 0)),
        ),
        compiler_params=pltpu.CompilerParams(
            dimension_semantics=("parallel",),
            # ~1.2 MiB of resident weights + tiny activations: far under the
            # 64 MiB physical VMEM of v7x, so this limit is safe on all gens.
            vmem_limit_bytes=32 * 1024 * 1024),
    )(seed_arr, x, w_qkv, w_o, bo_2d)
    return out


def init_params(key, n_embd=N_EMBD, num_heads=6, dtype=jnp.float32):
    """Mimics torch.nn.Linear's U(-1/sqrt(fan_in), 1/sqrt(fan_in)) init.

    Weights are stored (in_features, out_features) (transposed vs torch)."""
    hs = n_embd // num_heads
    kq, kk, kv, kw, kb = jax.random.split(key, 5)
    lim_in = 1.0 / (n_embd ** 0.5)
    lim_proj = 1.0 / ((num_heads * hs) ** 0.5)
    wq = jax.random.uniform(kq, (num_heads, n_embd, hs), dtype, -lim_in, lim_in)
    wk = jax.random.uniform(kk, (num_heads, n_embd, hs), dtype, -lim_in, lim_in)
    wv = jax.random.uniform(kv, (num_heads, n_embd, hs), dtype, -lim_in, lim_in)
    wo = jax.random.uniform(kw, (num_heads, hs, n_embd), dtype, -lim_proj, lim_proj)
    bo = jax.random.uniform(kb, (n_embd,), dtype, -lim_proj, lim_proj)
    return wq, wk, wv, wo, bo


def _reference(x, wq, wk, wv, wo, bo):
    """Pure-JAX f32 reference of the torch forward (eval mode)."""
    B, T, C = x.shape
    nh, _, hs = wq.shape
    mask = jnp.tril(jnp.ones((T, T), dtype=bool))
    outs = []
    for h in range(nh):
        q = x @ wq[h]
        k = x @ wk[h]
        v = x @ wv[h]
        s = jnp.einsum('btd,bsd->bts', q, k) * (hs ** -0.5)
        s = jnp.where(mask, s, -jnp.inf)
        w = jax.nn.softmax(s, axis=-1)
        outs.append(jnp.einsum('bts,bsd->btd', w, v))
    cat = jnp.concatenate(outs, axis=-1)
    return cat @ wo.reshape(nh * hs, C) + bo


if __name__ == "__main__":
    key = jax.random.PRNGKey(0)
    kx, kp = jax.random.split(key)

    B, T, C = 2, 8, N_EMBD
    num_heads = 6            # head_size = 384 // 6 = 64
    x = jax.random.normal(kx, (B, T, C), dtype=jnp.float32)
    wq, wk, wv, wo, bo = init_params(kp, C, num_heads)

    # Eval-mode forward (both Dropouts are identity); training=True enables the
    # in-kernel stochastic dropout path on attention probs and on the output.
    out = multi_head_attention(x, wq, wk, wv, wo, bo, training=False)
    out = jax.block_until_ready(out)

    ref = _reference(x, wq, wk, wv, wo, bo)
    assert out.shape == (B, T, C)
    # bf16 MXU operands with f32 accumulation -> small tolerance vs f32 ref
    # (intentional; keep operands f32 if tighter parity is ever required).
    assert jnp.allclose(out, ref, atol=3e-2, rtol=3e-2), \
        float(jnp.max(jnp.abs(out - ref)))

    print("KERNEL_OK")
</pallas_src>

<mosaic_0001>
module attributes {stable_mosaic.version = 11 : i64} {
  func.func @_mha_kernel(%arg0: i32, %arg1: memref<1xi32, #tpu.memory_space<smem>>, %arg2: memref<1x8x384xf32, #tpu.memory_space<vmem>>, %arg3: memref<384x1152xbf16, #tpu.memory_space<vmem>>, %arg4: memref<384x384xbf16, #tpu.memory_space<vmem>>, %arg5: memref<1x384xf32, #tpu.memory_space<vmem>>, %arg6: memref<1x8x384xf32, #tpu.memory_space<vmem>>) attributes {dimension_semantics = [#tpu.dimension_semantics<parallel>], iteration_bounds = array<i64: 2>, scalar_prefetch = 1 : i64, scratch_operands = 0 : i64, tpu.core_type = #tpu.core_type<tc>, window_params = [{transform_indices = @transform_0, window_bounds = array<i64: 1, 8, 384>}, {pipeline_mode = #tpu.pipeline_mode<synchronous>, transform_indices = @transform_1, window_bounds = array<i64: 384, 1152>}, {pipeline_mode = #tpu.pipeline_mode<synchronous>, transform_indices = @transform_2, window_bounds = array<i64: 384, 384>}, {pipeline_mode = #tpu.pipeline_mode<synchronous>, transform_indices = @transform_3, window_bounds = array<i64: 1, 384>}, {transform_indices = @transform_4, window_bounds = array<i64: 1, 8, 384>}]} {
    %c0 = arith.constant 0 : index
    %c0_0 = arith.constant 0 : index
    %c0_1 = arith.constant 0 : index
    %0 = vector.load %arg2[%c0, %c0_0, %c0_1] : memref<1x8x384xf32, #tpu.memory_space<vmem>>, vector<1x8x384xf32>
    %1 = vector.shape_cast %0 : vector<1x8x384xf32> to vector<8x384xf32>
    %2 = arith.truncf %1 : vector<8x384xf32> to vector<8x384xbf16>
    %c0_2 = arith.constant 0 : index
    %c0_3 = arith.constant 0 : index
    %3 = vector.load %arg3[%c0_2, %c0_3] : memref<384x1152xbf16, #tpu.memory_space<vmem>>, vector<384x1152xbf16>
    %cst = arith.constant dense<0.000000e+00> : vector<8x1152xf32>
    %4 = tpu.matmul %2, %3, %cst {dimension_numbers = #tpu.dot_dimension_numbers<[1], [0], [0], [1], [0, 0, 1, 1], [], []>} : vector<8x384xbf16>, vector<384x1152xbf16>, vector<8x1152xf32> -> vector<8x1152xf32>
    %5 = vector.shape_cast %4 : vector<8x1152xf32> to vector<1x8x1152xf32>
    %6 = tpu.iota {dimensions = array<i32: 0>} : vector<8x8xi32>
    %7 = tpu.iota {dimensions = array<i32: 1>} : vector<8x8xi32>
    %8 = arith.cmpi sle, %7, %6 : vector<8x8xi32>
    %9 = vector.shape_cast %8 : vector<8x8xi1> to vector<1x8x8xi1>
    %10 = vector.extract_strided_slice %5 {offsets = [0, 0, 0], sizes = [1, 8, 64], strides = [1, 1, 1]} : vector<1x8x1152xf32> to vector<1x8x64xf32>
    %11 = arith.truncf %10 : vector<1x8x64xf32> to vector<1x8x64xbf16>
    %12 = vector.extract_strided_slice %5 {offsets = [0, 0, 384], sizes = [1, 8, 64], strides = [1, 1, 1]} : vector<1x8x1152xf32> to vector<1x8x64xf32>
    %13 = arith.truncf %12 : vector<1x8x64xf32> to vector<1x8x64xbf16>
    %14 = vector.extract_strided_slice %5 {offsets = [0, 0, 768], sizes = [1, 8, 64], strides = [1, 1, 1]} : vector<1x8x1152xf32> to vector<1x8x64xf32>
    %15 = arith.truncf %14 : vector<1x8x64xf32> to vector<1x8x64xbf16>
    "tpu.trace_start"() <{level = 10 : i32, message = "btd,bsd->bts"}> : () -> ()
    %cst_4 = arith.constant dense<0.000000e+00> : vector<1x8x8xf32>
    %16 = tpu.matmul %11, %13, %cst_4 {dimension_numbers = #tpu.dot_dimension_numbers<[2], [2], [1], [1], [0, 0, 0, 1, 1, 1], [0], [0]>} : vector<1x8x64xbf16>, vector<1x8x64xbf16>, vector<1x8x8xf32> -> vector<1x8x8xf32>
    %cst_5 = arith.constant 0xFF800000 : f32
    "tpu.trace_stop"() : () -> ()
    %17 = vector.broadcast %cst_5 : f32 to vector<1x8x8xf32>
    %18 = arith.select %9, %16, %17 : vector<1x8x8xi1>, vector<1x8x8xf32>
    %cst_6 = arith.constant dense<0xFF800000> : vector<1x8xf32>
    %19 = vector.multi_reduction <maximumf>, %18, %cst_6 [2] : vector<1x8x8xf32> to vector<1x8xf32>
    %20 = vector.shape_cast %19 : vector<1x8xf32> to vector<1x8x1xf32>
    %21 = vector.broadcast %20 : vector<1x8x1xf32> to vector<1x8x8xf32>
    %22 = arith.subf %18, %21 : vector<1x8x8xf32>
    %23 = math.exp %22 : vector<1x8x8xf32>
    %cst_7 = arith.constant dense<0.000000e+00> : vector<1x8xf32>
    %24 = vector.multi_reduction <add>, %23, %cst_7 [2] : vector<1x8x8xf32> to vector<1x8xf32>
    %25 = vector.shape_cast %24 : vector<1x8xf32> to vector<1x8x1xf32>
    %26 = tpu.reciprocal %25 {approx = true} : vector<1x8x1xf32> -> vector<1x8x1xf32>
    %27 = vector.broadcast %26 : vector<1x8x1xf32> to vector<1x8x8xf32>
    %28 = arith.mulf %23, %27 : vector<1x8x8xf32>
    %29 = arith.truncf %28 : vector<1x8x8xf32> to vector<1x8x8xbf16>
    "tpu.trace_start"() <{level = 10 : i32, message = "bts,bsd->btd"}> : () -> ()
    %cst_8 = arith.constant dense<0.000000e+00> : vector<1x8x64xf32>
    %30 = tpu.matmul %29, %15, %cst_8 {dimension_numbers = #tpu.dot_dimension_numbers<[2], [1], [1], [2], [0, 0, 0, 1, 1, 2], [0], [0]>} : vector<1x8x8xbf16>, vector<1x8x64xbf16>, vector<1x8x64xf32> -> vector<1x8x64xf32>
    "tpu.trace_stop"() : () -> ()
    %31 = vector.extract_strided_slice %5 {offsets = [0, 0, 64], sizes = [1, 8, 64], strides = [1, 1, 1]} : vector<1x8x1152xf32> to vector<1x8x64xf32>
    %32 = arith.truncf %31 : vector<1x8x64xf32> to vector<1x8x64xbf16>
    %33 = vector.extract_strided_slice %5 {offsets = [0, 0, 448], sizes = [1, 8, 64], strides = [1, 1, 1]} : vector<1x8x1152xf32> to vector<1x8x64xf32>
    %34 = arith.truncf %33 : vector<1x8x64xf32> to vector<1x8x64xbf16>
    %35 = vector.extract_strided_slice %5 {offsets = [0, 0, 832], sizes = [1, 8, 64], strides = [1, 1, 1]} : vector<1x8x1152xf32> to vector<1x8x64xf32>
    %36 = arith.truncf %35 : vector<1x8x64xf32> to vector<1x8x64xbf16>
    "tpu.trace_start"() <{level = 10 : i32, message = "btd,bsd->bts"}> : () -> ()
    %cst_9 = arith.constant dense<0.000000e+00> : vector<1x8x8xf32>
    %37 = tpu.matmul %32, %34, %cst_9 {dimension_numbers = #tpu.dot_dimension_numbers<[2], [2], [1], [1], [0, 0, 0, 1, 1, 1], [0], [0]>} : vector<1x8x64xbf16>, vector<1x8x64xbf16>, vector<1x8x8xf32> -> vector<1x8x8xf32>
    %cst_10 = arith.constant 0xFF800000 : f32
    "tpu.trace_stop"() : () -> ()
    %38 = vector.broadcast %cst_10 : f32 to vector<1x8x8xf32>
    %39 = arith.select %9, %37, %38 : vector<1x8x8xi1>, vector<1x8x8xf32>
    %cst_11 = arith.constant dense<0xFF800000> : vector<1x8xf32>
    %40 = vector.multi_reduction <maximumf>, %39, %cst_11 [2] : vector<1x8x8xf32> to vector<1x8xf32>
    %41 = vector.shape_cast %40 : vector<1x8xf32> to vector<1x8x1xf32>
    %42 = vector.broadcast %41 : vector<1x8x1xf32> to vector<1x8x8xf32>
    %43 = arith.subf %39, %42 : vector<1x8x8xf32>
    %44 = math.exp %43 : vector<1x8x8xf32>
    %cst_12 = arith.constant dense<0.000000e+00> : vector<1x8xf32>
    %45 = vector.multi_reduction <add>, %44, %cst_12 [2] : vector<1x8x8xf32> to vector<1x8xf32>
    %46 = vector.shape_cast %45 : vector<1x8xf32> to vector<1x8x1xf32>
    %47 = tpu.reciprocal %46 {approx = true} : vector<1x8x1xf32> -> vector<1x8x1xf32>
    %48 = vector.broadcast %47 : vector<1x8x1xf32> to vector<1x8x8xf32>
    %49 = arith.mulf %44, %48 : vector<1x8x8xf32>
    %50 = arith.truncf %49 : vector<1x8x8xf32> to vector<1x8x8xbf16>
    "tpu.trace_start"() <{level = 10 : i32, message = "bts,bsd->btd"}> : () -> ()
    %cst_13 = arith.constant dense<0.000000e+00> : vector<1x8x64xf32>
    %51 = tpu.matmul %50, %36, %cst_13 {dimension_numbers = #tpu.dot_dimension_numbers<[2], [1], [1], [2], [0, 0, 0, 1, 1, 2], [0], [0]>} : vector<1x8x8xbf16>, vector<1x8x64xbf16>, vector<1x8x64xf32> -> vector<1x8x64xf32>
    "tpu.trace_stop"() : () -> ()
    %52 = vector.extract_strided_slice %5 {offsets = [0, 0, 128], sizes = [1, 8, 64], strides = [1, 1, 1]} : vector<1x8x1152xf32> to vector<1x8x64xf32>
    %53 = arith.truncf %52 : vector<1x8x64xf32> to vector<1x8x64xbf16>
    %54 = vector.extract_strided_slice %5 {offsets = [0, 0, 512], sizes = [1, 8, 64], strides = [1, 1, 1]} : vector<1x8x1152xf32> to vector<1x8x64xf32>
    %55 = arith.truncf %54 : vector<1x8x64xf32> to vector<1x8x64xbf16>
    %56 = vector.extract_strided_slice %5 {offsets = [0, 0, 896], sizes = [1, 8, 64], strides = [1, 1, 1]} : vector<1x8x1152xf32> to vector<1x8x64xf32>
    %57 = arith.truncf %56 : vector<1x8x64xf32> to vector<1x8x64xbf16>
    "tpu.trace_start"() <{level = 10 : i32, message = "btd,bsd->bts"}> : () -> ()
    %cst_14 = arith.constant dense<0.000000e+00> : vector<1x8x8xf32>
    %58 = tpu.matmul %53, %55, %cst_14 {dimension_numbers = #tpu.dot_dimension_numbers<[2], [2], [1], [1], [0, 0, 0, 1, 1, 1], [0], [0]>} : vector<1x8x64xbf16>, vector<1x8x64xbf16>, vector<1x8x8xf32> -> vector<1x8x8xf32>
    %cst_15 = arith.constant 0xFF800000 : f32
    "tpu.trace_stop"() : () -> ()
    %59 = vector.broadcast %cst_15 : f32 to vector<1x8x8xf32>
    %60 = arith.select %9, %58, %59 : vector<1x8x8xi1>, vector<1x8x8xf32>
    %cst_16 = arith.constant dense<0xFF800000> : vector<1x8xf32>
    %61 = vector.multi_reduction <maximumf>, %60, %cst_16 [2] : vector<1x8x8xf32> to vector<1x8xf32>
    %62 = vector.shape_cast %61 : vector<1x8xf32> to vector<1x8x1xf32>
    %63 = vector.broadcast %62 : vector<1x8x1xf32> to vector<1x8x8xf32>
    %64 = arith.subf %60, %63 : vector<1x8x8xf32>
    %65 = math.exp %64 : vector<1x8x8xf32>
    %cst_17 = arith.constant dense<0.000000e+00> : vector<1x8xf32>
    %66 = vector.multi_reduction <add>, %65, %cst_17 [2] : vector<1x8x8xf32> to vector<1x8xf32>
    %67 = vector.shape_cast %66 : vector<1x8xf32> to vector<1x8x1xf32>
    %68 = tpu.reciprocal %67 {approx = true} : vector<1x8x1xf32> -> vector<1x8x1xf32>
    %69 = vector.broadcast %68 : vector<1x8x1xf32> to vector<1x8x8xf32>
    %70 = arith.mulf %65, %69 : vector<1x8x8xf32>
    %71 = arith.truncf %70 : vector<1x8x8xf32> to vector<1x8x8xbf16>
    "tpu.trace_start"() <{level = 10 : i32, message = "bts,bsd->btd"}> : () -> ()
    %cst_18 = arith.constant dense<0.000000e+00> : vector<1x8x64xf32>
    %72 = tpu.matmul %71, %57, %cst_18 {dimension_numbers = #tpu.dot_dimension_numbers<[2], [1], [1], [2], [0, 0, 0, 1, 1, 2], [0], [0]>} : vector<1x8x8xbf16>, vector<1x8x64xbf16>, vector<1x8x64xf32> -> vector<1x8x64xf32>
    "tpu.trace_stop"() : () -> ()
    %73 = vector.extract_strided_slice %5 {offsets = [0, 0, 192], sizes = [1, 8, 64], strides = [1, 1, 1]} : vector<1x8x1152xf32> to vector<1x8x64xf32>
    %74 = arith.truncf %73 : vector<1x8x64xf32> to vector<1x8x64xbf16>
    %75 = vector.extract_strided_slice %5 {offsets = [0, 0, 576], sizes = [1, 8, 64], strides = [1, 1, 1]} : vector<1x8x1152xf32> to vector<1x8x64xf32>
    %76 = arith.truncf %75 : vector<1x8x64xf32> to vector<1x8x64xbf16>
    %77 = vector.extract_strided_slice %5 {offsets = [0, 0, 960], sizes = [1, 8, 64], strides = [1, 1, 1]} : vector<1x8x1152xf32> to vector<1x8x64xf32>
    %78 = arith.truncf %77 : vector<1x8x64xf32> to vector<1x8x64xbf16>
    "tpu.trace_start"() <{level = 10 : i32, message = "btd,bsd->bts"}> : () -> ()
    %cst_19 = arith.constant dense<0.000000e+00> : vector<1x8x8xf32>
    %79 = tpu.matmul %74, %76, %cst_19 {dimension_numbers = #tpu.dot_dimension_numbers<[2], [2], [1], [1], [0, 0, 0, 1, 1, 1], [0], [0]>} : vector<1x8x64xbf16>, vector<1x8x64xbf16>, vector<1x8x8xf32> -> vector<1x8x8xf32>
    %cst_20 = arith.constant 0xFF800000 : f32
    "tpu.trace_stop"() : () -> ()
    %80 = vector.broadcast %cst_20 : f32 to vector<1x8x8xf32>
    %81 = arith.select %9, %79, %80 : vector<1x8x8xi1>, vector<1x8x8xf32>
    %cst_21 = arith.constant dense<0xFF800000> : vector<1x8xf32>
    %82 = vector.multi_reduction <maximumf>, %81, %cst_21 [2] : vector<1x8x8xf32> to vector<1x8xf32>
    %83 = vector.shape_cast %82 : vector<1x8xf32> to vector<1x8x1xf32>
    %84 = vector.broadcast %83 : vector<1x8x1xf32> to vector<1x8x8xf32>
    %85 = arith.subf %81, %84 : vector<1x8x8xf32>
    %86 = math.exp %85 : vector<1x8x8xf32>
    %cst_22 = arith.constant dense<0.000000e+00> : vector<1x8xf32>
    %87 = vector.multi_reduction <add>, %86, %cst_22 [2] : vector<1x8x8xf32> to vector<1x8xf32>
    %88 = vector.shape_cast %87 : vector<1x8xf32> to vector<1x8x1xf32>
    %89 = tpu.reciprocal %88 {approx = true} : vector<1x8x1xf32> -> vector<1x8x1xf32>
    %90 = vector.broadcast %89 : vector<1x8x1xf32> to vector<1x8x8xf32>
    %91 = arith.mulf %86, %90 : vector<1x8x8xf32>
    %92 = arith.truncf %91 : vector<1x8x8xf32> to vector<1x8x8xbf16>
    "tpu.trace_start"() <{level = 10 : i32, message = "bts,bsd->btd"}> : () -> ()
    %cst_23 = arith.constant dense<0.000000e+00> : vector<1x8x64xf32>
    %93 = tpu.matmul %92, %78, %cst_23 {dimension_numbers = #tpu.dot_dimension_numbers<[2], [1], [1], [2], [0, 0, 0, 1, 1, 2], [0], [0]>} : vector<1x8x8xbf16>, vector<1x8x64xbf16>, vector<1x8x64xf32> -> vector<1x8x64xf32>
    "tpu.trace_stop"() : () -> ()
    %94 = vector.extract_strided_slice %5 {offsets = [0, 0, 256], sizes = [1, 8, 64], strides = [1, 1, 1]} : vector<1x8x1152xf32> to vector<1x8x64xf32>
    %95 = arith.truncf %94 : vector<1x8x64xf32> to vector<1x8x64xbf16>
    %96 = vector.extract_strided_slice %5 {offsets = [0, 0, 640], sizes = [1, 8, 64], strides = [1, 1, 1]} : vector<1x8x1152xf32> to vector<1x8x64xf32>
    %97 = arith.truncf %96 : vector<1x8x64xf32> to vector<1x8x64xbf16>
    %98 = vector.extract_strided_slice %5 {offsets = [0, 0, 1024], sizes = [1, 8, 64], strides = [1, 1, 1]} : vector<1x8x1152xf32> to vector<1x8x64xf32>
    %99 = arith.truncf %98 : vector<1x8x64xf32> to vector<1x8x64xbf16>
    "tpu.trace_start"() <{level = 10 : i32, message = "btd,bsd->bts"}> : () -> ()
    %cst_24 = arith.constant dense<0.000000e+00> : vector<1x8x8xf32>
    %100 = tpu.matmul %95, %97, %cst_24 {dimension_numbers = #tpu.dot_dimension_numbers<[2], [2], [1], [1], [0, 0, 0, 1, 1, 1], [0], [0]>} : vector<1x8x64xbf16>, vector<1x8x64xbf16>, vector<1x8x8xf32> -> vector<1x8x8xf32>
    %cst_25 = arith.constant 0xFF800000 : f32
    "tpu.trace_stop"() : () -> ()
    %101 = vector.broadcast %cst_25 : f32 to vector<1x8x8xf32>
    %102 = arith.select %9, %100, %101 : vector<1x8x8xi1>, vector<1x8x8xf32>
    %cst_26 = arith.constant dense<0xFF800000> : vector<1x8xf32>
    %103 = vector.multi_reduction <maximumf>, %102, %cst_26 [2] : vector<1x8x8xf32> to vector<1x8xf32>
    %104 = vector.shape_cast %103 : vector<1x8xf32> to vector<1x8x1xf32>
    %105 = vector.broadcast %104 : vector<1x8x1xf32> to vector<1x8x8xf32>
    %106 = arith.subf %102, %105 : vector<1x8x8xf32>
    %107 = math.exp %106 : vector<1x8x8xf32>
    %cst_27 = arith.constant dense<0.000000e+00> : vector<1x8xf32>
    %108 = vector.multi_reduction <add>, %107, %cst_27 [2] : vector<1x8x8xf32> to vector<1x8xf32>
    %109 = vector.shape_cast %108 : vector<1x8xf32> to vector<1x8x1xf32>
    %110 = tpu.reciprocal %109 {approx = true} : vector<1x8x1xf32> -> vector<1x8x1xf32>
    %111 = vector.broadcast %110 : vector<1x8x1xf32> to vector<1x8x8xf32>
    %112 = arith.mulf %107, %111 : vector<1x8x8xf32>
    %113 = arith.truncf %112 : vector<1x8x8xf32> to vector<1x8x8xbf16>
    "tpu.trace_start"() <{level = 10 : i32, message = "bts,bsd->btd"}> : () -> ()
    %cst_28 = arith.constant dense<0.000000e+00> : vector<1x8x64xf32>
    %114 = tpu.matmul %113, %99, %cst_28 {dimension_numbers = #tpu.dot_dimension_numbers<[2], [1], [1], [2], [0, 0, 0, 1, 1, 2], [0], [0]>} : vector<1x8x8xbf16>, vector<1x8x64xbf16>, vector<1x8x64xf32> -> vector<1x8x64xf32>
    "tpu.trace_stop"() : () -> ()
    %115 = vector.extract_strided_slice %5 {offsets = [0, 0, 320], sizes = [1, 8, 64], strides = [1, 1, 1]} : vector<1x8x1152xf32> to vector<1x8x64xf32>
    %116 = arith.truncf %115 : vector<1x8x64xf32> to vector<1x8x64xbf16>
    %117 = vector.extract_strided_slice %5 {offsets = [0, 0, 704], sizes = [1, 8, 64], strides = [1, 1, 1]} : vector<1x8x1152xf32> to vector<1x8x64xf32>
    %118 = arith.truncf %117 : vector<1x8x64xf32> to vector<1x8x64xbf16>
    %119 = vector.extract_strided_slice %5 {offsets = [0, 0, 1088], sizes = [1, 8, 64], strides = [1, 1, 1]} : vector<1x8x1152xf32> to vector<1x8x64xf32>
    %120 = arith.truncf %119 : vector<1x8x64xf32> to vector<1x8x64xbf16>
    "tpu.trace_start"() <{level = 10 : i32, message = "btd,bsd->bts"}> : () -> ()
    %cst_29 = arith.constant dense<0.000000e+00> : vector<1x8x8xf32>
    %121 = tpu.matmul %116, %118, %cst_29 {dimension_numbers = #tpu.dot_dimension_numbers<[2], [2], [1], [1], [0, 0, 0, 1, 1, 1], [0], [0]>} : vector<1x8x64xbf16>, vector<1x8x64xbf16>, vector<1x8x8xf32> -> vector<1x8x8xf32>
    %cst_30 = arith.constant 0xFF800000 : f32
    "tpu.trace_stop"() : () -> ()
    %122 = vector.broadcast %cst_30 : f32 to vector<1x8x8xf32>
    %123 = arith.select %9, %121, %122 : vector<1x8x8xi1>, vector<1x8x8xf32>
    %cst_31 = arith.constant dense<0xFF800000> : vector<1x8xf32>
    %124 = vector.multi_reduction <maximumf>, %123, %cst_31 [2] : vector<1x8x8xf32> to vector<1x8xf32>
    %125 = vector.shape_cast %124 : vector<1x8xf32> to vector<1x8x1xf32>
    %126 = vector.broadcast %125 : vector<1x8x1xf32> to vector<1x8x8xf32>
    %127 = arith.subf %123, %126 : vector<1x8x8xf32>
    %128 = math.exp %127 : vector<1x8x8xf32>
    %cst_32 = arith.constant dense<0.000000e+00> : vector<1x8xf32>
    %129 = vector.multi_reduction <add>, %128, %cst_32 [2] : vector<1x8x8xf32> to vector<1x8xf32>
    %130 = vector.shape_cast %129 : vector<1x8xf32> to vector<1x8x1xf32>
    %131 = tpu.reciprocal %130 {approx = true} : vector<1x8x1xf32> -> vector<1x8x1xf32>
    %132 = vector.broadcast %131 : vector<1x8x1xf32> to vector<1x8x8xf32>
    %133 = arith.mulf %128, %132 : vector<1x8x8xf32>
    %134 = arith.truncf %133 : vector<1x8x8xf32> to vector<1x8x8xbf16>
    "tpu.trace_start"() <{level = 10 : i32, message = "bts,bsd->btd"}> : () -> ()
    %cst_33 = arith.constant dense<0.000000e+00> : vector<1x8x64xf32>
    %135 = tpu.matmul %134, %120, %cst_33 {dimension_numbers = #tpu.dot_dimension_numbers<[2], [1], [1], [2], [0, 0, 0, 1, 1, 2], [0], [0]>} : vector<1x8x8xbf16>, vector<1x8x64xbf16>, vector<1x8x64xf32> -> vector<1x8x64xf32>
    "tpu.trace_stop"() : () -> ()
    %136 = tpu.concatenate %30, %51, %72, %93, %114, %135 in 2 : vector<1x8x64xf32>, vector<1x8x64xf32>, vector<1x8x64xf32>, vector<1x8x64xf32>, vector<1x8x64xf32>, vector<1x8x64xf32> -> vector<1x8x384xf32>
    %137 = vector.shape_cast %136 : vector<1x8x384xf32> to vector<8x384xf32>
    %138 = arith.truncf %137 : vector<8x384xf32> to vector<8x384xbf16>
    %c0_34 = arith.constant 0 : index
    %c0_35 = arith.constant 0 : index
    %139 = vector.load %arg4[%c0_34, %c0_35] : memref<384x384xbf16, #tpu.memory_space<vmem>>, vector<384x384xbf16>
    %cst_36 = arith.constant dense<0.000000e+00> : vector<8x384xf32>
    %140 = tpu.matmul %138, %139, %cst_36 {dimension_numbers = #tpu.dot_dimension_numbers<[1], [0], [0], [1], [0, 0, 1, 1], [], []>} : vector<8x384xbf16>, vector<384x384xbf16>, vector<8x384xf32> -> vector<8x384xf32>
    %c0_37 = arith.constant 0 : index
    %c0_38 = arith.constant 0 : index
    %141 = vector.load %arg5[%c0_37, %c0_38] : memref<1x384xf32, #tpu.memory_space<vmem>>, vector<1x384xf32>
    %142 = vector.broadcast %141 : vector<1x384xf32> to vector<8x384xf32>
    %143 = arith.addf %140, %142 : vector<8x384xf32>
    %144 = vector.shape_cast %143 : vector<8x384xf32> to vector<1x8x384xf32>
    %c0_39 = arith.constant 0 : index
    %c0_40 = arith.constant 0 : index
    %c0_41 = arith.constant 0 : index
    %145 = vector.load %arg6[%c0_39, %c0_40, %c0_41] : memref<1x8x384xf32, #tpu.memory_space<vmem>>, vector<1x8x384xf32>
    tpu.vector_store %arg6[%c0_39, %c0_40, %c0_41], %144 {strides = array<i32>} : memref<1x8x384xf32, #tpu.memory_space<vmem>>, vector<1x8x384xf32>,
    return
  }
  func.func @transform_0(%arg0: i32, %arg1: memref<1xi32, #tpu.memory_space<smem>>) -> (i32, i32, i32) {
    %c0_i32 = arith.constant 0 : i32
    %c0_i32_0 = arith.constant 0 : i32
    %c0_i32_1 = arith.constant 0 : i32
    return %arg0, %c0_i32, %c0_i32_0 : i32, i32, i32
  }
  func.func @transform_1(%arg0: i32, %arg1: memref<1xi32, #tpu.memory_space<smem>>) -> (i32, i32) {
    %c0_i32 = arith.constant 0 : i32
    %c0_i32_0 = arith.constant 0 : i32
    %c0_i32_1 = arith.constant 0 : i32
    return %c0_i32, %c0_i32_0 : i32, i32
  }
  func.func @transform_2(%arg0: i32, %arg1: memref<1xi32, #tpu.memory_space<smem>>) -> (i32, i32) {
    %c0_i32 = arith.constant 0 : i32
    %c0_i32_0 = arith.constant 0 : i32
    %c0_i32_1 = arith.constant 0 : i32
    return %c0_i32, %c0_i32_0 : i32, i32
  }
  func.func @transform_3(%arg0: i32, %arg1: memref<1xi32, #tpu.memory_space<smem>>) -> (i32, i32) {
    %c0_i32 = arith.constant 0 : i32
    %c0_i32_0 = arith.constant 0 : i32
    %c0_i32_1 = arith.constant 0 : i32
    return %c0_i32, %c0_i32_0 : i32, i32
  }
  func.func @transform_4(%arg0: i32, %arg1: memref<1xi32, #tpu.memory_space<smem>>) -> (i32, i32, i32) {
    %c0_i32 = arith.constant 0 : i32
    %c0_i32_0 = arith.constant 0 : i32
    %c0_i32_1 = arith.constant 0 : i32
    return %arg0, %c0_i32, %c0_i32_0 : i32, i32, i32
  }
}

</mosaic_0001>

<bundles_post_ra>
// kernel: tpu_custom_call.1
= control target key start
LH: loop header
LB: loop body
LE: loop exit
PB: predicated region body
PF: predicated region fallthrough
CT: control target
= control target key end

     0   :  { %11 = vsyncpa [#allocation5], 0  ;;  %s5118_s0 = inlined_call_operand.<no memory space> [shape: s32[1], index: 0, kind: input, shape index: {}]   ;;  %s5119_s1 = inlined_call_operand.hbm [shape: f32[2,8,384], index: 1, kind: input, shape index: {}]   ;;  %s5120_s2 = inlined_call_operand.hbm [shape: bf16[384,1152], index: 2, kind: input, shape index: {}]   ;;  %s5121_s3 = inlined_call_operand.hbm [shape: bf16[384,384], index: 3, kind: input, shape index: {}]   ;;  %s5122_s4 = inlined_call_operand.vmem [shape: f32[1,384], index: 4, kind: input, shape index: {}]   ;;  %s5123_s5 = inlined_call_operand.hbm [shape: f32[2,8,384], index: 5, kind: output, shape index: {}]  }
   0x1   :  { %13 = vsyncpa [#allocation5 + $0x1], 0 }
   0x2   :  { %14 = vsyncpa [#allocation8], 0 }
   0x3   :  { %15 = vsyncpa [#allocation6], 0 }
   0x4   :  { %17 = vsyncpa [#allocation6 + $0x1], 0  ;;  %s4816_s0 = smov 0   ;;  %s4818_s18 = smov 0  }
   0x5   :  { %s4820_s19 = smov 0   ;;  %s4822_s20 = smov 0  }
   0x6 LB: > { %s154_s23 = sshll.u32 %s5120_s2, 4  ;;  %s4840_s24 = sadd.s32 4294967295, %s4777_s20   ;;  %s4777_s20 = sphi %s4822_s20, %s5135_s20   ;;  %s4773_s19 = sphi %s4820_s19, %s5134_s19   ;;  %s4769_s18 = sphi %s4818_s18, %s5133_s18   ;;  %s4765_s0 = sphi %s4816_s0, %s5132_s0   ;;  %s155_s23 = int_to_ptr.hbm [resolvable:$true] %s154_s23 }
   0x7   : > { %p3054_p0 = scmp.ge.s32.totalorder %s4777_s20, 1  ;;  %p44_p1 = scmp.eq.s32.totalorder %s4840_s24, 0 }
   0x8   : > { %p143_p2 = scmp.lt.s32.totalorder %s4777_s20, 3  ;;  %s4779_s26 = smov [#allocation7]  }
   0x9   : > { %s156_s27 = sshll.u32 %s4779_s26, 4  ;;  %s168_s30 = sshll.u32 %s5121_s3, 4  ;;  %s157_s27 = int_to_ptr.vmem [resolvable:$true] %s156_s27  ;;  %s169_s30 = int_to_ptr.hbm [resolvable:$true] %s168_s30 }
   0xa   : > { %p4845_p3 = pnand %p3054_p0, %p143_p2  ;;  %s4780_s6 = smov [#allocation9]  }
   0xb   : > { %s170_s7 = sshll.u32 %s4780_s6, 4  ;;  %s4781_s8 = smov 576   ;;  %s171_s7 = int_to_ptr.vmem [resolvable:$true] %s170_s7 }
   0xc   : > { %p4533_p4 = pneg %p4845_p3  ;;  %s4782_s9 = smov 36  }
   0xd   : > { %s4783_s10 = smov 192   ;;  %s4784_s11 = smov 12  }
   0xe   : > { %p4534_p6 = pnand %p4533_p4, %p44_p1  ;;  %s3053_s12 = sadd.s32 4294967294, %s4777_s20  }
   0xf   : > { %s4859_s13 = sadd.s32 1, %s4777_s20   ;;  %s30_s15 = sadd.s32 1, %s4773_s19 }
  0x10   : > { %4536 = dma.hbm_to_vmem [thread:$0]  (!%p4534_p6), %s155_s23, 27648, %s157_s27, [#allocation8], %s4781_s8, %s4781_s8, %s4782_s9  }
  0x11   : > { %4539 = dma.hbm_to_vmem [thread:$0]  (!%p4534_p6), %s169_s30, 9216, %s171_s7, [#allocation8], %s4783_s10, %s4783_s10, %s4784_s11  }
  0x12   : > { %s27_s14 = ssub.s32 %s4777_s20, %s4859_s13  ;;  %p37_p8 = scmp.ne.s32.totalorder %s4773_s19, %s4769_s18 }
  0x13   : > { %p28_p7 = scmp.eq.s32.totalorder %s27_s14, 0  ;;  %p38_p9 = scmp.eq.s32.totalorder %s4777_s20, 0 }
  0x14   : > { %p43_p10 = scmp.ne.s32.totalorder %s4769_s18, %s4765_s0  ;;  %p130_p13 = scmp.eq.s32.totalorder %s4840_s24, 1 }
  0x15   : > { %s4870_s16 = scalar_select %p28_p7, %s4773_s19, %s30_s15  }
  0x16   : > { %p39_p11 = por %p38_p9, %p37_p8  ;;  %p4874_p12 = por %p44_p1, %p43_p10 }
  0x17   : > { %p136_p0 = scmp.eq.s32.totalorder %s3053_s12, 1  ;;  %p4550_p2 = scmp.lt.s32.totalorder %s4777_s20, 2 }
  0x18   : > { %s187_s21 = sand.u32 1, %s4773_s19   ;;  %p4881_p4 = por %p130_p13, %p37_p8 }
  0x19   : > { %p4885_p6 = por %p136_p0, %p43_p10  ;;  %s4517_s26 = smul.u32 24, %s187_s21 }
  0x1a   : > { %s4518_s27 = smul.u32 24, %s4777_s20  ;;  %p4890_p7 = pnand %p4550_p2, %p39_p11 }
  0x1b   : > { %s191_s7 = scalar_lea.vmem [#allocation4], %s4517_s26  ;;  %s188_s10 = scalar_lea.sflag [#allocation5], %s187_s21 }
  0x1c   : > { %s196_s6 = scalar_lea.hbm %s5119_s1, %s4518_s27  ;;  %s200_s8 = sshll.u32 %s191_s7, 4  ;;  %s201_s8 = int_to_ptr.vmem [resolvable:$true] %s200_s8 }
  0x1d   : > { %s198_s9 = sshll.u32 %s196_s6, 4  ;;  %p4681_p9 = pneg %p4890_p7  ;;  %s199_s9 = int_to_ptr.hbm [resolvable:$true] %s198_s9 }
  0x1e   : > { %s4677_s11 = sshra.s32 %s199_s9, 4  ;;  %s4684_s29 = scalar_lea.hbm %s5119_s1, 48  ;;  %s4678_s11 = int_to_ptr.hbm [resolvable:$true] %s4677_s11 }
  0x1f   : > { %s4679_s12 = scalar_lea.hbm %s4678_s11, 24  ;;  %p4685_p13 = scmp.lt.s32.totalorder %s4678_s11, %s5119_s1 }
  0x20   : > { %p4680_p8 = scmp.ne.s32.totalorder %s4678_s11, %s4679_s12  ;;  %p4686_p0 = scmp.lt.s32.totalorder %s4684_s29, %s4679_s12 }
  0x22   : > { %p4682_p10 = pnand %p4681_p9, %p4680_p8  ;;  %p4687_p2 = por %p4686_p0, %p4685_p13 }
  0x24   : > { %p4683_p11 = pneg %p4682_p10 }
  0x26   : > { %p4688_p5 = pnand %p4687_p2, %p4683_p11 }
  0x28   : > { %4691 = shalt.err (!%p4688_p5)
}
  0x29   : > { %4543 = dma.hbm_to_vmem [thread:$0]  (!%p4890_p7), %s199_s9, 384, %s201_s8, %s188_s10  }
  0x2a   : > { %209 = sbr.rel (%p4845_p3) target bundleno = 1454 (0x5ae), region = 36  ;;  %s4910_s21 = sand.u32 (!%p4845_p3), 1, %s4769_s18  }
  0x2b   : > { %s4519_s26 = smul.u32 (!%p4845_p3), 24, %s4910_s21  ;;  %s212_s6 = scalar_lea.sflag (!%p4845_p3), [#allocation5], %s4910_s21 }
  0x2d   : > { %s4916_s7 = scalar_lea.vmem (!%p4845_p3), [#allocation4], %s4519_s26 }
  0x2f   : > { %4752 = dma.done.wait (%p4874_p12), %s212_s6, 384  }
  0x30   : > { %4754 = vsyncadd (%p4874_p12), %s212_s6, 4294966912 }
  0x31   : > { %4756 = dma.done.wait (%p44_p1), [#allocation8], 36864  }
  0x32   : > { %4758 = vsyncadd (%p44_p1), [#allocation8], 4294930432  ;;  %v3316_v0 = vld [vmem:[#allocation7 + $0x1f8] sm:$0xf]  ;;  %v4296_v1 = vld [vmem:[#allocation7 + $0x218] sm:$0xf0] }
  0x33   : > { %v3604_v2 = vld [vmem:[#allocation7 + $0x438] sm:$0xf]  ;;  %v3317_v3 = vor.u32 %v4296_v1, %v3316_v0  ;;  %v4368_v4 = vld [vmem:[#allocation7 + $0x458] sm:$0xf0]  ;;  %v3318_v10 = vld [vmem:[#allocation7 + $0x21c] sm:$0xf0] }
  0x34   : > { %v3892_v5 = vld [vmem:[#allocation7 + $0x678] sm:$0xf]  ;;  %v4440_v6 = vld [vmem:[#allocation7 + $0x698] sm:$0xf0]  ;;  %v3605_v7 = vor.u32 %v4368_v4, %v3604_v2  ;;  %v3280_v11 = vld [vmem:[#allocation7 + $0x1b0] sm:$0xf] }
  0x35   : > { %v3893_v8 = vor.u32 %v4440_v6, %v3892_v5  ;;  %v4292_v9 = vld [vmem:[#allocation7 + $0x1fc] sm:$0xf]  ;;  %1602 = vmatpush.bf16.msra.mxu0 %v3317_v3  ;;  %v4287_v13 = vld [vmem:[#allocation7 + $0x1d0] sm:$0xf0]  ;;  %v3568_v14 = vld [vmem:[#allocation7 + $0x3f0] sm:$0xf] }
  0x36   : > { %v3321_v12 = vor.u32 %v4292_v9, %v3318_v10  ;;  %v4359_v15 = vld [vmem:[#allocation7 + $0x410] sm:$0xf0]  ;;  %1615 = vmatpush.bf16.msra.mxu1 %v3605_v7  ;;  %v3281_v16 = vor.u32 %v4287_v13, %v3280_v11  ;;  %v3856_v18 = vld [vmem:[#allocation7 + $0x630] sm:$0xf]  ;;  %v3282_v22 = vld [vmem:[#allocation7 + $0x1d4] sm:$0xf0] }
  0x37   : > { %1628 = vmatpush.bf16.msra.mxu2 %v3893_v8  ;;  %v3569_v17 = vor.u32 %v4359_v15, %v3568_v14  ;;  %v4431_v19 = vld [vmem:[#allocation7 + $0x650] sm:$0xf0]  ;;  %v3244_v23 = vld [vmem:[#allocation7 + $0x168] sm:$0xf]  ;;  %v4278_v24 = vld [vmem:[#allocation7 + $0x188] sm:$0xf0] }
  0x38   : > { %v4283_v20 = vld [vmem:[#allocation7 + $0x1b4] sm:$0xf]  ;;  %1641 = vmatpush.bf16.msra.mxu3 %v3321_v12  ;;  %v3857_v21 = vor.u32 %v4431_v19, %v3856_v18  ;;  %v3532_v26 = vld [vmem:[#allocation7 + $0x3a8] sm:$0xf]  ;;  %v4350_v27 = vld [vmem:[#allocation7 + $0x3c8] sm:$0xf0]  ;;  %v3245_v29 = vor.u32 %v4278_v24, %v3244_v23 }
  0x39   : > { %v3285_v25 = vor.u32 %v4283_v20, %v3282_v22  ;;  %v3820_v28 = vld [vmem:[#allocation7 + $0x5e8] sm:$0xf]  ;;  %1603 = vmatpush.bf16.msra.mxu0 %v3281_v16  ;;  %v4422_v30 = vld [vmem:[#allocation7 + $0x608] sm:$0xf0]  ;;  %v3246_v32 = vld [vmem:[#allocation7 + $0x18c] sm:$0xf0]  ;;  %v3533_v33 = vor.u32 %v4350_v27, %v3532_v26 }
  0x3a   : > { %v4274_v31 = vld [vmem:[#allocation7 + $0x16c] sm:$0xf]  ;;  %1616 = vmatpush.bf16.msra.mxu1 %v3569_v17  ;;  %v3821_v34 = vor.u32 %v4422_v30, %v3820_v28  ;;  %v3208_v35 = vld [vmem:[#allocation7 + $0x120] sm:$0xf]  ;;  %v4269_v36 = vld [vmem:[#allocation7 + $0x140] sm:$0xf0] }
  0x3b   : > { %1629 = vmatpush.bf16.msra.mxu2 %v3857_v21  ;;  %v3496_v37 = vld [vmem:[#allocation7 + $0x360] sm:$0xf]  ;;  %v3249_v38 = vor.u32 %v4274_v31, %v3246_v32  ;;  %v4341_v39 = vld [vmem:[#allocation7 + $0x380] sm:$0xf0]  ;;  %v3210_v43 = vld [vmem:[#allocation7 + $0x144] sm:$0xf0]  ;;  %v3209_v44 = vor.u32 %v4269_v36, %v3208_v35 }
  0x3c   : > { %1642 = vmatpush.bf16.msra.mxu3 %v3285_v25  ;;  %v3784_v40 = vld [vmem:[#allocation7 + $0x5a0] sm:$0xf]  ;;  %v4413_v41 = vld [vmem:[#allocation7 + $0x5c0] sm:$0xf0]  ;;  %v3497_v45 = vor.u32 %v4341_v39, %v3496_v37  ;;  %v3172_v47 = vld [vmem:[#allocation7 + $0xd8] sm:$0xf] }
  0x3d   : > { %v4265_v42 = vld [vmem:[#allocation7 + $0x124] sm:$0xf]  ;;  %1604 = vmatpush.bf16.msra.mxu0 %v3245_v29  ;;  %v3785_v46 = vor.u32 %v4413_v41, %v3784_v40  ;;  %v4260_v48 = vld [vmem:[#allocation7 + $0xf8] sm:$0xf0]  ;;  %v3460_v49 = vld [vmem:[#allocation7 + $0x318] sm:$0xf] }
  0x3e   : > { %1617 = vmatpush.bf16.msra.mxu1 %v3533_v33  ;;  %v3213_v50 = vor.u32 %v4265_v42, %v3210_v43  ;;  %v4332_v51 = vld [vmem:[#allocation7 + $0x338] sm:$0xf0]  ;;  %v3748_v52 = vld [vmem:[#allocation7 + $0x558] sm:$0xf]  ;;  %v3174_v55 = vld [vmem:[#allocation7 + $0xfc] sm:$0xf0]  ;;  %v3173_v56 = vor.u32 %v4260_v48, %v3172_v47 }
  0x3f   : > { %1630 = vmatpush.bf16.msra.mxu2 %v3821_v34  ;;  %v4404_v53 = vld [vmem:[#allocation7 + $0x578] sm:$0xf0]  ;;  %v3461_v57 = vor.u32 %v4332_v51, %v3460_v49  ;;  %v3136_v59 = vld [vmem:[#allocation7 + $0x90] sm:$0xf]  ;;  %v4251_v60 = vld [vmem:[#allocation7 + $0xb0] sm:$0xf0] }
  0x40   : > { %1643 = vmatpush.bf16.msra.mxu3 %v3249_v38  ;;  %v4256_v54 = vld [vmem:[#allocation7 + $0xdc] sm:$0xf]  ;;  %v3749_v58 = vor.u32 %v4404_v53, %v3748_v52  ;;  %v3424_v61 = vld [vmem:[#allocation7 + $0x2d0] sm:$0xf]  ;;  %v4323_v63 = vld [vmem:[#allocation7 + $0x2f0] sm:$0xf0]  ;;  %v3137_v4 = vor.u32 %v4251_v60, %v3136_v59 }
  0x41   : > { %1605 = vmatpush.bf16.msra.mxu0 %v3209_v44  ;;  %v3177_v62 = vor.u32 %v4256_v54, %v3174_v55  ;;  %v3712_v0 = vld [vmem:[#allocation7 + $0x510] sm:$0xf]  ;;  %v4395_v1 = vld [vmem:[#allocation7 + $0x530] sm:$0xf0]  ;;  %v3138_v3 = vld [vmem:[#allocation7 + $0xb4] sm:$0xf0]  ;;  %v3425_v5 = vor.u32 %v4323_v63, %v3424_v61 }
  0x42   : > { %1618 = vmatpush.bf16.msra.mxu1 %v3497_v45  ;;  %v4247_v2 = vld [vmem:[#allocation7 + $0x94] sm:$0xf]  ;;  %v3713_v6 = vor.u32 %v4395_v1, %v3712_v0  ;;  %v3100_v7 = vld [vmem:[#allocation7 + $0x48] sm:$0xf]  ;;  %v4242_v8 = vld [vmem:[#allocation7 + $0x68] sm:$0xf0] }
  0x43   : > { %1631 = vmatpush.bf16.msra.mxu2 %v3785_v46  ;;  %v3388_v9 = vld [vmem:[#allocation7 + $0x288] sm:$0xf]  ;;  %v3141_v10 = vor.u32 %v4247_v2, %v3138_v3  ;;  %v4314_v11 = vld [vmem:[#allocation7 + $0x2a8] sm:$0xf0]  ;;  %v3102_v15 = vld [vmem:[#allocation7 + $0x6c] sm:$0xf0]  ;;  %v3101_v16 = vor.u32 %v4242_v8, %v3100_v7 }
  0x44   : > { %1644 = vmatpush.bf16.msra.mxu3 %v3213_v50  ;;  %v3676_v12 = vld [vmem:[#allocation7 + $0x4c8] sm:$0xf]  ;;  %v4386_v13 = vld [vmem:[#allocation7 + $0x4e8] sm:$0xf0]  ;;  %v3064_v17 = vld [vmem:[#allocation7] sm:$0xf]  ;;  %v3389_v19 = vor.u32 %v4314_v11, %v3388_v9 }
  0x45   : > { %1606 = vmatpush.bf16.msra.mxu0 %v3173_v56  ;;  %v4238_v14 = vld [vmem:[#allocation7 + $0x4c] sm:$0xf]  ;;  %v4233_v18 = vld [vmem:[#allocation7 + $0x20] sm:$0xf0]  ;;  %v3677_v20 = vor.u32 %v4386_v13, %v3676_v12  ;;  %v3352_v21 = vld [vmem:[#allocation7 + $0x240] sm:$0xf] }
  0x46   : > { %1619 = vmatpush.bf16.msra.mxu1 %v3461_v57  ;;  %v4305_v22 = vld [vmem:[#allocation7 + $0x260] sm:$0xf0]  ;;  %v3640_v23 = vld [vmem:[#allocation7 + $0x480] sm:$0xf]  ;;  %v3105_v24 = vor.u32 %v4238_v14, %v3102_v15  ;;  %v3066_v27 = vld [vmem:[#allocation7 + $0x24] sm:$0xf0]  ;;  %v3065_v31 = vor.u32 %v4233_v18, %v3064_v17 }
  0x47   : > { %1632 = vmatpush.bf16.msra.mxu2 %v3749_v58  ;;  %v4377_v25 = vld [vmem:[#allocation7 + $0x4a0] sm:$0xf0]  ;;  %v4364_v28 = vld [vmem:[#allocation7 + $0x43c] sm:$0xf]  ;;  %v3606_v29 = vld [vmem:[#allocation7 + $0x45c] sm:$0xf0]  ;;  %v3353_v35 = vor.u32 %v4305_v22, %v3352_v21 }
  0x48   : > { %1645 = vmatpush.bf16.msra.mxu3 %v3177_v62  ;;  %v4229_v26 = vld [vmem:[#allocation7 + $0x4] sm:$0xf]  ;;  %v4436_v30 = vld [vmem:[#allocation7 + $0x67c] sm:$0xf]  ;;  %v3894_v32 = vld [vmem:[#allocation7 + $0x69c] sm:$0xf0]  ;;  %v3641_v36 = vor.u32 %v4377_v25, %v3640_v23  ;;  %v3609_v40 = vor.u32 %v4364_v28, %v3606_v29 }
  0x49   : > { %1607 = vmatpush.bf16.msra.mxu0 %v3137_v4  ;;  %v3324_v33 = vld [vmem:[#allocation7 + $0x200] sm:$0xf]  ;;  %v4297_v34 = vld [vmem:[#allocation7 + $0x220] sm:$0xf0]  ;;  %v3069_v39 = vor.u32 %v4229_v26, %v3066_v27  ;;  %v3897_v41 = vor.u32 %v4436_v30, %v3894_v32  ;;  %v4355_v43 = vld [vmem:[#allocation7 + $0x3f4] sm:$0xf] }
  0x4a   : > { %1620 = vmatpush.bf16.msra.mxu1 %v3425_v5  ;;  %v3612_v37 = vld [vmem:[#allocation7 + $0x440] sm:$0xf]  ;;  %v4369_v38 = vld [vmem:[#allocation7 + $0x460] sm:$0xf0]  ;;  %v3325_v42 = vor.u32 %v4297_v34, %v3324_v33  ;;  %v3570_v44 = vld [vmem:[#allocation7 + $0x414] sm:$0xf0] }
  0x4b   : > { %1633 = vmatpush.bf16.msra.mxu2 %v3713_v6  ;;  %v4427_v45 = vld [vmem:[#allocation7 + $0x634] sm:$0xf]  ;;  %v3613_v46 = vor.u32 %v4369_v38, %v3612_v37  ;;  %v3858_v47 = vld [vmem:[#allocation7 + $0x654] sm:$0xf0]  ;;  %v4288_v49 = vld [vmem:[#allocation7 + $0x1d8] sm:$0xf0]  ;;  %v3573_v52 = vor.u32 %v4355_v43, %v3570_v44 }
  0x4c   : > { %1646 = vmatpush.bf16.msra.mxu3 %v3141_v10  ;;  %v3288_v48 = vld [vmem:[#allocation7 + $0x1b8] sm:$0xf]  ;;  %v4360_v51 = vld [vmem:[#allocation7 + $0x418] sm:$0xf0]  ;;  %v4346_v53 = vld [vmem:[#allocation7 + $0x3ac] sm:$0xf]  ;;  %v3861_v55 = vor.u32 %v4427_v45, %v3858_v47 }
  0x4d   : > { %1608 = vmatpush.bf16.msra.mxu0 %v3101_v16  ;;  %v3576_v50 = vld [vmem:[#allocation7 + $0x3f8] sm:$0xf]  ;;  %v3534_v54 = vld [vmem:[#allocation7 + $0x3cc] sm:$0xf0]  ;;  %v3289_v56 = vor.u32 %v4288_v49, %v3288_v48  ;;  %v4418_v57 = vld [vmem:[#allocation7 + $0x5ec] sm:$0xf] }
  0x4e   : > { %1621 = vmatpush.bf16.msra.mxu1 %v3389_v19  ;;  %v3822_v58 = vld [vmem:[#allocation7 + $0x60c] sm:$0xf0]  ;;  %v3577_v60 = vor.u32 %v4360_v51, %v3576_v50  ;;  %v4279_v62 = vld [vmem:[#allocation7 + $0x190] sm:$0xf0]  ;;  %v254_v0 = vld [vmem:[%s4916_s7 + $0x10] sm:$0xff]  ;;  %v3537_v4 = vor.u32 %v4346_v53, %v3534_v54  ;;  %s4785_s25 = smov 64  }
  0x4f   : > { %1634 = vmatpush.bf16.msra.mxu2 %v3677_v20  ;;  %v252_v59 = vld [vmem:[%s4916_s7] sm:$0xff]  ;;  %v4930_v3 = vpack.c.bf16 %v254_v0, %v254_v0  ;;  %v4337_v5 = vld [vmem:[#allocation7 + $0x364] sm:$0xf]  ;;  %v3825_v6 = vor.u32 %v4418_v57, %v3822_v58  ;;  %v253_v10 = vld [vmem:[%s4916_s7 + $0x8] sm:$0xff]  ;;  %vm1961_vm0 = vcmask 523264   ;;  %vm1998_vm1 = vcmask 1043456  }
  0x50   : > { %1647 = vmatpush.bf16.msra.mxu3 %v3105_v24  ;;  %v3252_v61 = vld [vmem:[#allocation7 + $0x170] sm:$0xf]  ;;  %v4927_v63 = vpack.c.bf16 %v252_v59, %v252_v59  ;;  %v4351_v2 = vld [vmem:[#allocation7 + $0x3d0] sm:$0xf0]  ;;  %v3498_v8 = vld [vmem:[#allocation7 + $0x384] sm:$0xf0]  ;;  %v4935_v15 = vpack.c.bf16 %v253_v10, %v253_v10 }
  0x51   : > { %1609 = vmatpush.bf16.msra.mxu0 %v3065_v31  ;;  %v3540_v1 = vld [vmem:[#allocation7 + $0x3b0] sm:$0xf]  ;;  %v3253_v7 = vor.u32 %v4279_v62, %v3252_v61  ;;  %v4409_v9 = vld [vmem:[#allocation7 + $0x5a4] sm:$0xf]  ;;  %v3786_v12 = vld [vmem:[#allocation7 + $0x5c4] sm:$0xf0]  ;;  %v3501_v18 = vor.u32 %v4337_v5, %v3498_v8 }
  0x52   : > { %1622 = vmatpush.bf16.msra.mxu1 %v3353_v35  ;;  %v3541_v11 = vor.u32 %v4351_v2, %v3540_v1  ;;  %v3216_v13 = vld [vmem:[#allocation7 + $0x128] sm:$0xf]  ;;  %v4270_v14 = vld [vmem:[#allocation7 + $0x148] sm:$0xf0]  ;;  %v3789_v19 = vor.u32 %v4409_v9, %v3786_v12  ;;  %v4328_v21 = vld [vmem:[#allocation7 + $0x31c] sm:$0xf] }
  0x53   : > { %1635 = vmatpush.bf16.msra.mxu2 %v3641_v36  ;;  %v3504_v16 = vld [vmem:[#allocation7 + $0x368] sm:$0xf]  ;;  %v4342_v17 = vld [vmem:[#allocation7 + $0x388] sm:$0xf0]  ;;  %v3217_v20 = vor.u32 %v4270_v14, %v3216_v13  ;;  %v3462_v22 = vld [vmem:[#allocation7 + $0x33c] sm:$0xf0] }
  0x54   : > { %1648 = vmatpush.bf16.msra.mxu3 %v3069_v39  ;;  %1610 = vmatmul.bf16.vlgmr.msra.gmra.mxu0 %v4927_v63  ;;  %v4400_v23 = vld [vmem:[#allocation7 + $0x55c] sm:$0xf]  ;;  %v3505_v24 = vor.u32 %v4342_v17, %v3504_v16  ;;  %v3750_v25 = vld [vmem:[#allocation7 + $0x57c] sm:$0xf0]  ;;  %v4261_v27 = vld [vmem:[#allocation7 + $0x100] sm:$0xf0]  ;;  %v3465_v30 = vor.u32 %v4328_v21, %v3462_v22 }
  0x55   : > { %1654 = vmatpush.bf16.msrb.mxu0 %v3609_v40  ;;  %1623 = vmatmul.bf16.vlgmr.msra.gmra.mxu1 %v4935_v15  ;;  %v3180_v26 = vld [vmem:[#allocation7 + $0xe0] sm:$0xf]  ;;  %v4333_v29 = vld [vmem:[#allocation7 + $0x340] sm:$0xf0]  ;;  %v3753_v31 = vor.u32 %v4400_v23, %v3750_v25  ;;  %v4319_v33 = vld [vmem:[#allocation7 + $0x2d4] sm:$0xf] }
  0x56   : > { %1667 = vmatpush.bf16.msrb.mxu1 %v3897_v41  ;;  %1636 = vmatmul.bf16.vlgmr.msra.gmra.mxu2 %v4930_v3  ;;  %v3468_v28 = vld [vmem:[#allocation7 + $0x320] sm:$0xf]  ;;  %v3181_v32 = vor.u32 %v4261_v27, %v3180_v26  ;;  %v3426_v34 = vld [vmem:[#allocation7 + $0x2f4] sm:$0xf0]  ;;  %v4391_v35 = vld [vmem:[#allocation7 + $0x514] sm:$0xf] }
  0x57   : > { %1680 = vmatpush.bf16.msrb.mxu2 %v3325_v42  ;;  %1649 = vmatmul.bf16.vlgmr.msra.gmra.mxu3 %v4927_v63  ;;  %v3469_v36 = vor.u32 %v4333_v29, %v3468_v28  ;;  %v3714_v37 = vld [vmem:[#allocation7 + $0x534] sm:$0xf0]  ;;  %v4252_v39 = vld [vmem:[#allocation7 + $0xb8] sm:$0xf0]  ;;  %v3429_v42 = vor.u32 %v4319_v33, %v3426_v34  ;;  %v4310_v45 = vld [vmem:[#allocation7 + $0x28c] sm:$0xf] }
  0x58   : > { %1693 = vmatpush.bf16.msrb.mxu3 %v3613_v46  ;;  %v3144_v38 = vld [vmem:[#allocation7 + $0x98] sm:$0xf]  ;;  %v4324_v41 = vld [vmem:[#allocation7 + $0x2f8] sm:$0xf0]  ;;  %v3717_v43 = vor.u32 %v4391_v35, %v3714_v37  ;;  %v3390_v46 = vld [vmem:[#allocation7 + $0x2ac] sm:$0xf0] }
  0x59   : > { %1655 = vmatpush.bf16.msrb.mxu0 %v3573_v52  ;;  %v3432_v40 = vld [vmem:[#allocation7 + $0x2d8] sm:$0xf]  ;;  %v3145_v44 = vor.u32 %v4252_v39, %v3144_v38  ;;  %v4382_v47 = vld [vmem:[#allocation7 + $0x4cc] sm:$0xf]  ;;  %v3678_v49 = vld [vmem:[#allocation7 + $0x4ec] sm:$0xf0]  ;;  %v3393_v54 = vor.u32 %v4310_v45, %v3390_v46 }
  0x5a   : > { %1668 = vmatpush.bf16.msrb.mxu1 %v3861_v55  ;;  %v3433_v48 = vor.u32 %v4324_v41, %v3432_v40  ;;  %v3108_v50 = vld [vmem:[#allocation7 + $0x50] sm:$0xf]  ;;  %v4243_v51 = vld [vmem:[#allocation7 + $0x70] sm:$0xf0]  ;;  %v4301_v55 = vld [vmem:[#allocation7 + $0x244] sm:$0xf]  ;;  %v3681_v57 = vor.u32 %v4382_v47, %v3678_v49 }
  0x5b   : > { %1681 = vmatpush.bf16.msrb.mxu2 %v3289_v56  ;;  %v3396_v52 = vld [vmem:[#allocation7 + $0x290] sm:$0xf]  ;;  %v4315_v53 = vld [vmem:[#allocation7 + $0x2b0] sm:$0xf0]  ;;  %v3354_v56 = vld [vmem:[#allocation7 + $0x264] sm:$0xf0]  ;;  %v3109_v58 = vor.u32 %v4243_v51, %v3108_v50 }
  0x5c   : > { %1694 = vmatpush.bf16.msrb.mxu3 %v3577_v60  ;;  %v4373_v59 = vld [vmem:[#allocation7 + $0x484] sm:$0xf]  ;;  %v3642_v60 = vld [vmem:[#allocation7 + $0x4a4] sm:$0xf0]  ;;  %v3397_v62 = vor.u32 %v4315_v53, %v3396_v52  ;;  %v4234_v0 = vld [vmem:[#allocation7 + $0x28] sm:$0xf0] }
  0x5d   : > { %1656 = vmatpush.bf16.msrb.mxu0 %v3537_v4  ;;  %v3072_v61 = vld [vmem:[#allocation7 + $0x8] sm:$0xf]  ;;  %v4306_v2 = vld [vmem:[#allocation7 + $0x268] sm:$0xf0]  ;;  %v3900_v4 = vld [vmem:[#allocation7 + $0x680] sm:$0xf] }
  0x5e   : > { %1669 = vmatpush.bf16.msrb.mxu1 %v3825_v6  ;;  %v3360_v1 = vld [vmem:[#allocation7 + $0x248] sm:$0xf]  ;;  %v4441_v5 = vld [vmem:[#allocation7 + $0x6a0] sm:$0xf0]  ;;  %v3073_v12 = vor.u32 %v4234_v0, %v3072_v61  ;;  %v4432_v21 = vld [vmem:[#allocation7 + $0x658] sm:$0xf0] }
  0x5f   : > { %1682 = vmatpush.bf16.msrb.mxu2 %v3253_v7  ;;  %v4293_v6 = vld [vmem:[#allocation7 + $0x204] sm:$0xf]  ;;  %v3357_v7 = vor.u32 %v4301_v55, %v3354_v56  ;;  %v3326_v8 = vld [vmem:[#allocation7 + $0x224] sm:$0xf0]  ;;  %v3361_v16 = vor.u32 %v4306_v2, %v3360_v1  ;;  %v3901_v17 = vor.u32 %v4441_v5, %v3900_v4  ;;  %v4284_v22 = vld [vmem:[#allocation7 + $0x1bc] sm:$0xf] }
  0x60   : > { %1695 = vmatpush.bf16.msrb.mxu3 %v3541_v11  ;;  %v4365_v9 = vld [vmem:[#allocation7 + $0x444] sm:$0xf]  ;;  %v3614_v10 = vld [vmem:[#allocation7 + $0x464] sm:$0xf0]  ;;  %v3645_v11 = vor.u32 %v4373_v59, %v3642_v60  ;;  %v4356_v25 = vld [vmem:[#allocation7 + $0x3fc] sm:$0xf] }
  0x61   : > { %1657 = vmatpush.bf16.msrb.mxu0 %v3501_v18  ;;  %v4437_v13 = vld [vmem:[#allocation7 + $0x684] sm:$0xf]  ;;  %v3902_v14 = vld [vmem:[#allocation7 + $0x6a4] sm:$0xf0]  ;;  %v3329_v18 = vor.u32 %v4293_v6, %v3326_v8  ;;  %v3578_v26 = vld [vmem:[#allocation7 + $0x41c] sm:$0xf0] }
  0x62   : > { %1670 = vmatpush.bf16.msrb.mxu1 %v3789_v19  ;;  %v3617_v19 = vor.u32 %v4365_v9, %v3614_v10  ;;  %v3905_v23 = vor.u32 %v4437_v13, %v3902_v14  ;;  %v4428_v27 = vld [vmem:[#allocation7 + $0x63c] sm:$0xf]  ;;  %v3866_v28 = vld [vmem:[#allocation7 + $0x65c] sm:$0xf0]  ;;  %v4423_v33 = vld [vmem:[#allocation7 + $0x610] sm:$0xf0] }
  0x63   : > { %1683 = vmatpush.bf16.msrb.mxu2 %v3217_v20  ;;  %v3864_v20 = vld [vmem:[#allocation7 + $0x638] sm:$0xf]  ;;  %v4275_v34 = vld [vmem:[#allocation7 + $0x174] sm:$0xf]  ;;  %v3869_v35 = vor.u32 %v4428_v27, %v3866_v28  ;;  %v4414_v45 = vld [vmem:[#allocation7 + $0x5c8] sm:$0xf0] }
  0x64   : > { %1696 = vmatpush.bf16.msrb.mxu3 %v3505_v24  ;;  %v3290_v24 = vld [vmem:[#allocation7 + $0x1dc] sm:$0xf0]  ;;  %v3865_v29 = vor.u32 %v4432_v21, %v3864_v20  ;;  %v4347_v37 = vld [vmem:[#allocation7 + $0x3b4] sm:$0xf]  ;;  %v3542_v38 = vld [vmem:[#allocation7 + $0x3d4] sm:$0xf0] }
  0x65   : > { %1658 = vmatpush.bf16.msrb.mxu0 %v3465_v30  ;;  %v3293_v30 = vor.u32 %v4284_v22, %v3290_v24  ;;  %v4419_v39 = vld [vmem:[#allocation7 + $0x5f4] sm:$0xf]  ;;  %v3830_v40 = vld [vmem:[#allocation7 + $0x614] sm:$0xf0]  ;;  %v4266_v46 = vld [vmem:[#allocation7 + $0x12c] sm:$0xf] }
  0x66   : > { %1671 = vmatpush.bf16.msrb.mxu1 %v3753_v31  ;;  %v3581_v31 = vor.u32 %v4356_v25, %v3578_v26  ;;  %v3833_v47 = vor.u32 %v4419_v39, %v3830_v40  ;;  %v4338_v49 = vld [vmem:[#allocation7 + $0x36c] sm:$0xf]  ;;  %v3506_v50 = vld [vmem:[#allocation7 + $0x38c] sm:$0xf0]  ;;  %v3756_v56 = vld [vmem:[#allocation7 + $0x560] sm:$0xf] }
  0x67   : > { %1684 = vmatpush.bf16.msrb.mxu2 %v3181_v32  ;;  %v3828_v32 = vld [vmem:[#allocation7 + $0x5f0] sm:$0xf]  ;;  %v4410_v51 = vld [vmem:[#allocation7 + $0x5ac] sm:$0xf]  ;;  %v3509_v55 = vor.u32 %v4338_v49, %v3506_v50  ;;  %v3182_v60 = vld [vmem:[#allocation7 + $0x104] sm:$0xf0] }
  0x68   : > { %1697 = vmatpush.bf16.msrb.mxu3 %v3469_v36  ;;  %v3254_v36 = vld [vmem:[#allocation7 + $0x194] sm:$0xf0]  ;;  %v3829_v41 = vor.u32 %v4423_v33, %v3828_v32  ;;  %v3794_v52 = vld [vmem:[#allocation7 + $0x5cc] sm:$0xf0]  ;;  %v4329_v61 = vld [vmem:[#allocation7 + $0x324] sm:$0xf] }
  0x69   : > { %1659 = vmatpush.bf16.msrb.mxu0 %v3429_v42  ;;  %v3257_v42 = vor.u32 %v4275_v34, %v3254_v36  ;;  %v3797_v59 = vor.u32 %v4410_v51, %v3794_v52  ;;  %v4401_v0 = vld [vmem:[#allocation7 + $0x564] sm:$0xf]  ;;  %v3758_v1 = vld [vmem:[#allocation7 + $0x584] sm:$0xf0]  ;;  %v3720_v6 = vld [vmem:[#allocation7 + $0x518] sm:$0xf] }
  0x6a   : > { %1672 = vmatpush.bf16.msrb.mxu1 %v3717_v43  ;;  %v3545_v43 = vor.u32 %v4347_v37, %v3542_v38  ;;  %v4248_v8 = vld [vmem:[#allocation7 + $0x9c] sm:$0xf]  ;;  %v3761_v9 = vor.u32 %v4401_v0, %v3758_v1  ;;  %v3146_v10 = vld [vmem:[#allocation7 + $0xbc] sm:$0xf0]  ;;  %v4387_v20 = vld [vmem:[#allocation7 + $0x4f0] sm:$0xf0] }
  0x6b   : > { %1685 = vmatpush.bf16.msrb.mxu2 %v3145_v44  ;;  %v3792_v44 = vld [vmem:[#allocation7 + $0x5a8] sm:$0xf]  ;;  %v4392_v13 = vld [vmem:[#allocation7 + $0x51c] sm:$0xf]  ;;  %v3722_v14 = vld [vmem:[#allocation7 + $0x53c] sm:$0xf0] }
  0x6c   : > { %1698 = vmatpush.bf16.msrb.mxu3 %v3433_v48  ;;  %v3218_v48 = vld [vmem:[#allocation7 + $0x14c] sm:$0xf0]  ;;  %v3793_v53 = vor.u32 %v4414_v45, %v3792_v44  ;;  %v4239_v21 = vld [vmem:[#allocation7 + $0x54] sm:$0xf]  ;;  %v3725_v22 = vor.u32 %v4392_v13, %v3722_v14  ;;  %v3398_v25 = vld [vmem:[#allocation7 + $0x2b4] sm:$0xf0] }
  0x6d   : > { %1660 = vmatpush.bf16.msrb.mxu0 %v3393_v54  ;;  %v3221_v54 = vor.u32 %v4266_v46, %v3218_v48  ;;  %v4311_v24 = vld [vmem:[#allocation7 + $0x294] sm:$0xf]  ;;  %v3686_v27 = vld [vmem:[#allocation7 + $0x4f4] sm:$0xf0]  ;;  %v4378_v32 = vld [vmem:[#allocation7 + $0x4a8] sm:$0xf0] }
  0x6e   : > { %1673 = vmatpush.bf16.msrb.mxu1 %v3681_v57  ;;  %v4405_v57 = vld [vmem:[#allocation7 + $0x580] sm:$0xf0]  ;;  %v4383_v26 = vld [vmem:[#allocation7 + $0x4d4] sm:$0xf]  ;;  %v4230_v33 = vld [vmem:[#allocation7 + $0xc] sm:$0xf] }
  0x6f   : > { %1686 = vmatpush.bf16.msrb.mxu2 %v3109_v58  ;;  %v4257_v58 = vld [vmem:[#allocation7 + $0xe4] sm:$0xf]  ;;  %v3757_v2 = vor.u32 %v4405_v57, %v3756_v56  ;;  %v3074_v34 = vld [vmem:[#allocation7 + $0x2c] sm:$0xf0]  ;;  %v4302_v36 = vld [vmem:[#allocation7 + $0x24c] sm:$0xf] }
  0x70   : > { %1699 = vmatpush.bf16.msrb.mxu3 %v3397_v62  ;;  %v3470_v62 = vld [vmem:[#allocation7 + $0x344] sm:$0xf0]  ;;  %v3185_v4 = vor.u32 %v4257_v58, %v3182_v60  ;;  %v3362_v37 = vld [vmem:[#allocation7 + $0x26c] sm:$0xf0]  ;;  %v4374_v38 = vld [vmem:[#allocation7 + $0x48c] sm:$0xf]  ;;  %v3077_v45 = vor.u32 %v4230_v33, %v3074_v34 }
  0x71   : > { %1661 = vmatpush.bf16.msrb.mxu0 %v3357_v7  ;;  %v3473_v5 = vor.u32 %v4329_v61, %v3470_v62  ;;  %v4396_v7 = vld [vmem:[#allocation7 + $0x538] sm:$0xf0]  ;;  %v3650_v39 = vld [vmem:[#allocation7 + $0x4ac] sm:$0xf0]  ;;  %v3332_v40 = vld [vmem:[#allocation7 + $0x208] sm:$0xf]  ;;  %v3365_v46 = vor.u32 %v4302_v36, %v3362_v37 }
  0x72   : > { %1674 = vmatpush.bf16.msrb.mxu1 %v3645_v11  ;;  %v4320_v11 = vld [vmem:[#allocation7 + $0x2dc] sm:$0xf]  ;;  %v4370_v44 = vld [vmem:[#allocation7 + $0x468] sm:$0xf0]  ;;  %v3296_v49 = vld [vmem:[#allocation7 + $0x1c0] sm:$0xf] }
  0x73   : > { %1687 = vmatpush.bf16.msrb.mxu2 %v3073_v12  ;;  %v3434_v12 = vld [vmem:[#allocation7 + $0x2fc] sm:$0xf0]  ;;  %v3908_v50 = vld [vmem:[#allocation7 + $0x688] sm:$0xf]  ;;  %v4442_v51 = vld [vmem:[#allocation7 + $0x6a8] sm:$0xf0] }
  0x74   : > { %1700 = vmatpush.bf16.msrb.mxu3 %v3361_v16  ;;  %1662 = vmatmul.bf16.vlgmr.msrb.gmra.mxu0 %v4935_v15  ;;  %v3721_v16 = vor.u32 %v4396_v7, %v3720_v6  ;;  %v3584_v56 = vld [vmem:[#allocation7 + $0x400] sm:$0xf]  ;;  %v4361_v57 = vld [vmem:[#allocation7 + $0x420] sm:$0xf0]  ;;  %v3909_v58 = vor.u32 %v4442_v51, %v3908_v50  ;;  %v3260_v60 = vld [vmem:[#allocation7 + $0x178] sm:$0xf] }
  0x75   : > { %1706 = vmatpush.bf16.msra.mxu0 %v3901_v17  ;;  %1675 = vmatmul.bf16.vlgmr.msrb.gmra.mxu1 %v4930_v3  ;;  %v3149_v17 = vor.u32 %v4248_v8, %v3146_v10  ;;  %v3872_v61 = vld [vmem:[#allocation7 + $0x640] sm:$0xf]  ;;  %v4433_v62 = vld [vmem:[#allocation7 + $0x660] sm:$0xf0]  ;;  %v3585_v1 = vor.u32 %v4361_v57, %v3584_v56  ;;  %v3548_v6 = vld [vmem:[#allocation7 + $0x3b8] sm:$0xf] }
  0x76   : > { %1719 = vmatpush.bf16.msra.mxu1 %v3329_v18  ;;  %1688 = vmatmul.bf16.vlgmr.msrb.gmra.mxu2 %v4927_v63  ;;  %v3437_v18 = vor.u32 %v4320_v11, %v3434_v12  ;;  %v4352_v7 = vld [vmem:[#allocation7 + $0x3d8] sm:$0xf0]  ;;  %v3873_v8 = vor.u32 %v4433_v62, %v3872_v61  ;;  %v3224_v10 = vld [vmem:[#allocation7 + $0x130] sm:$0xf]  ;;  %v3836_v11 = vld [vmem:[#allocation7 + $0x5f8] sm:$0xf] }
  0x77   : > { %1732 = vmatpush.bf16.msra.mxu2 %v3617_v19  ;;  %1701 = vmatmul.bf16.vlgmr.msrb.gmra.mxu3 %v4935_v15  ;;  %v3684_v19 = vld [vmem:[#allocation7 + $0x4d0] sm:$0xf]  ;;  %v4424_v12 = vld [vmem:[#allocation7 + $0x618] sm:$0xf0]  ;;  %v3549_v14 = vor.u32 %v4352_v7, %v3548_v6  ;;  %v3764_v36 = vld [vmem:[#allocation7 + $0x568] sm:$0xf] }
  0x78   : > { %1745 = vmatpush.bf16.msra.mxu3 %v3905_v23  ;;  %v3110_v23 = vld [vmem:[#allocation7 + $0x74] sm:$0xf0]  ;;  %v3685_v28 = vor.u32 %v4387_v20, %v3684_v19  ;;  %v3512_v19 = vld [vmem:[#allocation7 + $0x370] sm:$0xf]  ;;  %v4343_v20 = vld [vmem:[#allocation7 + $0x390] sm:$0xf0] }
  0x79   : > { %1707 = vmatpush.bf16.msra.mxu0 %v3865_v29  ;;  %v3648_v29 = vld [vmem:[#allocation7 + $0x488] sm:$0xf]  ;;  %v4406_v37 = vld [vmem:[#allocation7 + $0x588] sm:$0xf0]  ;;  %v4316_v56 = vld [vmem:[#allocation7 + $0x2b8] sm:$0xf0] }
  0x7a   : > { %1720 = vmatpush.bf16.msra.mxu1 %v3293_v30  ;;  %v3113_v30 = vor.u32 %v4239_v21, %v3110_v23  ;;  %v3837_v21 = vor.u32 %v4424_v12, %v3836_v11  ;;  %v3188_v23 = vld [vmem:[#allocation7 + $0xe8] sm:$0xf]  ;;  %v3080_v57 = vld [vmem:[#allocation7 + $0x10] sm:$0xf]  ;;  %v3692_v61 = vld [vmem:[#allocation7 + $0x4d8] sm:$0xf] }
  0x7b   : > { %1733 = vmatpush.bf16.msra.mxu2 %v3581_v31  ;;  %v3401_v31 = vor.u32 %v4311_v24, %v3398_v25  ;;  %v3800_v24 = vld [vmem:[#allocation7 + $0x5b0] sm:$0xf]  ;;  %v4415_v25 = vld [vmem:[#allocation7 + $0x5d0] sm:$0xf0]  ;;  %v4388_v62 = vld [vmem:[#allocation7 + $0x4f8] sm:$0xf0] }
  0x7c   : > { %1746 = vmatpush.bf16.msra.mxu3 %v3869_v35  ;;  %v3689_v35 = vor.u32 %v4383_v26, %v3686_v27  ;;  %v3513_v27 = vor.u32 %v4343_v20, %v3512_v19  ;;  %v3801_v33 = vor.u32 %v4415_v25, %v3800_v24  ;;  %v3622_v6 = vld [vmem:[#allocation7 + $0x46c] sm:$0xf0]  ;;  %v3693_v11 = vor.u32 %v4388_v62, %v3692_v61  ;;  %v4231_v19 = vld [vmem:[#allocation7 + $0x14] sm:$0xf]  ;;  %v3082_v20 = vld [vmem:[#allocation7 + $0x34] sm:$0xf0] }
  0x7d   : > { %1708 = vmatpush.bf16.msra.mxu0 %v3829_v41  ;;  %v4298_v41 = vld [vmem:[#allocation7 + $0x228] sm:$0xf0]  ;;  %v3368_v7 = vld [vmem:[#allocation7 + $0x250] sm:$0xf]  ;;  %v4429_v24 = vld [vmem:[#allocation7 + $0x644] sm:$0xf] }
  0x7e   : > { %1721 = vmatpush.bf16.msra.mxu1 %v3257_v42  ;;  %v3649_v42 = vor.u32 %v4378_v32, %v3648_v29  ;;  %v3333_v48 = vor.u32 %v4298_v41, %v3332_v40  ;;  %v4267_v29 = vld [vmem:[#allocation7 + $0x134] sm:$0xf]  ;;  %v4334_v32 = vld [vmem:[#allocation7 + $0x348] sm:$0xf0]  ;;  %v4253_v40 = vld [vmem:[#allocation7 + $0xc0] sm:$0xf0] }
  0x7f   : > { %1734 = vmatpush.bf16.msra.mxu2 %v3545_v43  ;;  %v3620_v43 = vld [vmem:[#allocation7 + $0x448] sm:$0xf]  ;;  %v4258_v41 = vld [vmem:[#allocation7 + $0xec] sm:$0xf]  ;;  %v3520_v61 = vld [vmem:[#allocation7 + $0x378] sm:$0xf] }
  0x80   : > { %1747 = vmatpush.bf16.msra.mxu3 %v3833_v47  ;;  %v3653_v47 = vor.u32 %v4374_v38, %v3650_v39  ;;  %v3621_v52 = vor.u32 %v4370_v44, %v3620_v43  ;;  %v3440_v43 = vld [vmem:[#allocation7 + $0x2e0] sm:$0xf]  ;;  %v4325_v44 = vld [vmem:[#allocation7 + $0x300] sm:$0xf0]  ;;  %v3874_v25 = vld [vmem:[#allocation7 + $0x664] sm:$0xf0] }
  0x81   : > { %1709 = vmatpush.bf16.msra.mxu0 %v3793_v53  ;;  %v4289_v53 = vld [vmem:[#allocation7 + $0x1e0] sm:$0xf0]  ;;  %v3441_v51 = vor.u32 %v4325_v44, %v3440_v43  ;;  %v4290_v43 = vld [vmem:[#allocation7 + $0x1e8] sm:$0xf0]  ;;  %v4344_v62 = vld [vmem:[#allocation7 + $0x398] sm:$0xf0] }
  0x82   : > { %1722 = vmatpush.bf16.msra.mxu1 %v3221_v54  ;;  %v4294_v54 = vld [vmem:[#allocation7 + $0x20c] sm:$0xf]  ;;  %vm1982_vm3 = vcmask 64512   ;;  %s250_s8 = scalar_lea.vmem [#allocation10], %s4519_s26  ;;  %s4520_s9 = smul.u32 24, %s4840_s24 }
  0x83   : > { %1735 = vmatpush.bf16.msra.mxu2 %v3509_v55  ;;  %v3334_v55 = vld [vmem:[#allocation7 + $0x22c] sm:$0xf0]  ;;  %s2961_s14 = sshll.u32 %s250_s8, 4  ;;  %s2948_s29 = scalar_lea.sflag [#allocation6], %s4910_s21  ;;  %s2962_s14 = int_to_ptr.vmem [resolvable:$true] %s2961_s14 }
  0x84   : > { %1748 = vmatpush.bf16.msra.mxu3 %v3797_v59  ;;  %v3297_v59 = vor.u32 %v4289_v53, %v3296_v49  ;;  %v3337_v0 = vor.u32 %v4294_v54, %v3334_v55  ;;  %v4397_v49 = vld [vmem:[#allocation7 + $0x540] sm:$0xf0]  ;;  %v3154_v54 = vld [vmem:[#allocation7 + $0xc4] sm:$0xf0]  ;;  %v3404_v55 = vld [vmem:[#allocation7 + $0x298] sm:$0xf]  ;;  %s2959_s12 = scalar_lea.hbm %s5123_s5, %s4520_s9 }
  0x85   : > { %1710 = vmatpush.bf16.msra.mxu0 %v3757_v2  ;;  %v4280_v2 = vld [vmem:[#allocation7 + $0x198] sm:$0xf0]  ;;  %v4249_v53 = vld [vmem:[#allocation7 + $0xa4] sm:$0xf]  ;;  %s2963_s15 = sshll.u32 %s2959_s12, 4  ;;  %s4727_s6 = scalar_lea.hbm %s5123_s5, 48  ;;  %s2964_s15 = int_to_ptr.hbm [resolvable:$true] %s2963_s15 }
  0x86   : > { %1723 = vmatpush.bf16.msra.mxu1 %v3185_v4  ;;  %v4285_v4 = vld [vmem:[#allocation7 + $0x1c4] sm:$0xf]  ;;  %s4721_s24 = sshra.s32 %s2964_s15, 4  ;;  %s4722_s24 = int_to_ptr.hbm [resolvable:$true] %s4721_s24 }
  0x87   : > { %1736 = vmatpush.bf16.msra.mxu2 %v3473_v5  ;;  %v3298_v5 = vld [vmem:[#allocation7 + $0x1e4] sm:$0xf0]  ;;  %s4723_s30 = scalar_lea.hbm %s4722_s24, 24  ;;  %p4728_p12 = scmp.lt.s32.totalorder %s4722_s24, %s5123_s5 }
  0x88   : > { %1749 = vmatpush.bf16.msra.mxu3 %v3761_v9  ;;  %v3261_v9 = vor.u32 %v4280_v2, %v3260_v60  ;;  %v3301_v13 = vor.u32 %v4285_v4, %v3298_v5  ;;  %v4235_v60 = vld [vmem:[#allocation7 + $0x30] sm:$0xf0]  ;;  %v4366_v2 = vld [vmem:[#allocation7 + $0x44c] sm:$0xf]  ;;  %v4240_v4 = vld [vmem:[#allocation7 + $0x5c] sm:$0xf]  ;;  %p4724_p1 = scmp.ne.s32.totalorder %s4722_s24, %s4723_s30  ;;  %p4729_p7 = scmp.lt.s32.totalorder %s4727_s6, %s4723_s30 }
  0x89   : > { %1711 = vmatpush.bf16.msra.mxu0 %v3721_v16  ;;  %v4271_v16 = vld [vmem:[#allocation7 + $0x150] sm:$0xf0]  ;;  %v3118_v5 = vld [vmem:[#allocation7 + $0x7c] sm:$0xf0]  ;;  %v3081_v12 = vor.u32 %v4235_v60, %v3080_v57  ;;  %v4330_v57 = vld [vmem:[#allocation7 + $0x32c] sm:$0xf] }
  0x8a   : > { %1724 = vmatpush.bf16.msra.mxu1 %v3149_v17  ;;  %v4276_v17 = vld [vmem:[#allocation7 + $0x17c] sm:$0xf]  ;;  %v3478_v60 = vld [vmem:[#allocation7 + $0x34c] sm:$0xf0]  ;;  %p4725_p3 = pnand %p4724_p1, %p4881_p4  ;;  %p4730_p8 = por %p4729_p7, %p4728_p12 }
  0x8b   : > { %1737 = vmatpush.bf16.msra.mxu2 %v3437_v18  ;;  %v3262_v18 = vld [vmem:[#allocation7 + $0x19c] sm:$0xf0] }
  0x8c   : > { %1750 = vmatpush.bf16.msra.mxu3 %v3725_v22  ;;  %v3225_v22 = vor.u32 %v4271_v16, %v3224_v10  ;;  %v3265_v26 = vor.u32 %v4276_v17, %v3262_v18  ;;  %v3910_v10 = vld [vmem:[#allocation7 + $0x6ac] sm:$0xf0]  ;;  %v3121_v16 = vor.u32 %v4240_v4, %v3118_v5  ;;  %v3625_v17 = vor.u32 %v4366_v2, %v3622_v6  ;;  %v3232_v4 = vld [vmem:[#allocation7 + $0x138] sm:$0xf]  ;;  %v4272_v5 = vld [vmem:[#allocation7 + $0x158] sm:$0xf0]  ;;  %p4726_p5 = pneg %p4725_p3 }
  0x8d   : > { %1712 = vmatpush.bf16.msra.mxu0 %v3685_v28  ;;  %v4262_v28 = vld [vmem:[#allocation7 + $0x108] sm:$0xf0]  ;;  %v3481_v6 = vor.u32 %v4330_v57, %v3478_v60  ;;  %v4236_v57 = vld [vmem:[#allocation7 + $0x38] sm:$0xf0]  ;;  %v3630_v60 = vld [vmem:[#allocation7 + $0x474] sm:$0xf0] }
  0x8e   : > { %1725 = vmatpush.bf16.msra.mxu1 %v3113_v30  ;;  %v3226_v30 = vld [vmem:[#allocation7 + $0x154] sm:$0xf0]  ;;  %v3189_v34 = vor.u32 %v4262_v28, %v3188_v23  ;;  %v3586_v23 = vld [vmem:[#allocation7 + $0x424] sm:$0xf0]  ;;  %v3550_v28 = vld [vmem:[#allocation7 + $0x3dc] sm:$0xf0]  ;;  %p4731_p9 = pnand %p4730_p8, %p4726_p5 }
  0x8f   : > { %1738 = vmatpush.bf16.msra.mxu2 %v3401_v31  ;;  %v3476_v31 = vld [vmem:[#allocation7 + $0x328] sm:$0xf]  ;;  %v3229_v38 = vor.u32 %v4267_v29, %v3226_v30  ;;  %v3085_v29 = vor.u32 %v4231_v19, %v3082_v20  ;;  %v4312_v20 = vld [vmem:[#allocation7 + $0x29c] sm:$0xf] }
  0x90   : > { %1751 = vmatpush.bf16.msra.mxu3 %v3689_v35  ;;  %v3152_v35 = vld [vmem:[#allocation7 + $0xa0] sm:$0xf]  ;;  %v3477_v39 = vor.u32 %v4334_v32, %v3476_v31  ;;  %v3628_v31 = vld [vmem:[#allocation7 + $0x450] sm:$0xf]  ;;  %v4371_v32 = vld [vmem:[#allocation7 + $0x470] sm:$0xf0] }
  0x91   : > { %1713 = vmatpush.bf16.msra.mxu0 %v3649_v42  ;;  %v3190_v42 = vld [vmem:[#allocation7 + $0x10c] sm:$0xf0] }
  0x92   : > { %1726 = vmatpush.bf16.msra.mxu1 %v3077_v45  ;;  %v3765_v45 = vor.u32 %v4406_v37, %v3764_v36  ;;  %v3193_v50 = vor.u32 %v4258_v41, %v3190_v42  ;;  %v4362_v36 = vld [vmem:[#allocation7 + $0x428] sm:$0xf0]  ;;  %v3340_v37 = vld [vmem:[#allocation7 + $0x210] sm:$0xf]  ;;  %v3304_v42 = vld [vmem:[#allocation7 + $0x1c8] sm:$0xf] }
  0x93   : > { %1739 = vmatpush.bf16.msra.mxu2 %v3365_v46  ;;  %v3153_v46 = vor.u32 %v4253_v40, %v3152_v35  ;;  %v3629_v35 = vor.u32 %v4371_v32, %v3628_v31  ;;  %v3838_v40 = vld [vmem:[#allocation7 + $0x61c] sm:$0xf0]  ;;  %v4303_v32 = vld [vmem:[#allocation7 + $0x254] sm:$0xf] }
  0x94   : > { %1752 = vmatpush.bf16.msra.mxu3 %v3653_v47  ;;  %1714 = vmatmul.bf16.vlgmr.msra.gmra.mxu0 %v4930_v3  ;;  %v3116_v47 = vld [vmem:[#allocation7 + $0x58] sm:$0xf] }
  0x95   : > { %1758 = vmatpush.bf16.msrb.mxu0 %v3333_v48  ;;  %1727 = vmatmul.bf16.vlgmr.msra.gmra.mxu1 %v4927_v63  ;;  %v3728_v48 = vld [vmem:[#allocation7 + $0x520] sm:$0xf] }
  0x96   : > { %1771 = vmatpush.bf16.msrb.mxu1 %v3621_v52  ;;  %1740 = vmatmul.bf16.vlgmr.msra.gmra.mxu2 %v4935_v15  ;;  %v4244_v52 = vld [vmem:[#allocation7 + $0x78] sm:$0xf0] }
  0x97   : > { %1753 = vmatmul.bf16.vlgmr.msra.gmra.mxu3 %v4930_v3  ;;  %1784 = vmatpush.bf16.msrb.mxu2 %v3909_v58  ;;  %v3729_v58 = vor.u32 %v4397_v49, %v3728_v48  ;;  %v3514_v48 = vld [vmem:[#allocation7 + $0x394] sm:$0xf0]  ;;  %v3556_v49 = vld [vmem:[#allocation7 + $0x3c0] sm:$0xf] }
  0x98   : > { %1797 = vmatpush.bf16.msrb.mxu3 %v3337_v0  ;;  %v3157_v0 = vor.u32 %v4249_v53, %v3154_v54  ;;  %v3305_v53 = vor.u32 %v4290_v43, %v3304_v42  ;;  %v3268_v54 = vld [vmem:[#allocation7 + $0x180] sm:$0xf]  ;;  %v4443_v42 = vld [vmem:[#allocation7 + $0x6b0] sm:$0xf0] }
  0x99   : > { %1759 = vmatpush.bf16.msrb.mxu0 %v3297_v59  ;;  %v3117_v59 = vor.u32 %v4244_v52, %v3116_v47  ;;  %v3802_v52 = vld [vmem:[#allocation7 + $0x5d4] sm:$0xf0]  ;;  %v3124_v43 = vld [vmem:[#allocation7 + $0x60] sm:$0xf] }
  0x9a   : > { %1772 = vmatpush.bf16.msrb.mxu1 %v3585_v1  ;;  %v3405_v1 = vor.u32 %v4316_v56, %v3404_v55  ;;  %v4281_v55 = vld [vmem:[#allocation7 + $0x1a0] sm:$0xf0] }
  0x9b   : > { %1785 = vmatpush.bf16.msrb.mxu2 %v3873_v8  ;;  %v4307_v8 = vld [vmem:[#allocation7 + $0x270] sm:$0xf0]  ;;  %v3269_v2 = vor.u32 %v4281_v55, %v3268_v54  ;;  %v3880_v54 = vld [vmem:[#allocation7 + $0x648] sm:$0xf]  ;;  %v4434_v55 = vld [vmem:[#allocation7 + $0x668] sm:$0xf0] }
  0x9c   : > { %1798 = vmatpush.bf16.msrb.mxu3 %v3301_v13  ;;  %v3656_v13 = vld [vmem:[#allocation7 + $0x490] sm:$0xf]  ;;  %v3369_v18 = vor.u32 %v4307_v8, %v3368_v7  ;;  %v4321_v7 = vld [vmem:[#allocation7 + $0x2e4] sm:$0xf]  ;;  %v3521_v8 = vor.u32 %v4344_v62, %v3520_v61  ;;  %v3881_v62 = vor.u32 %v4434_v55, %v3880_v54 }
  0x9d   : > { %1760 = vmatpush.bf16.msrb.mxu0 %v3261_v9  ;;  %v4438_v9 = vld [vmem:[#allocation7 + $0x68c] sm:$0xf] }
  0x9e   : > { %1773 = vmatpush.bf16.msrb.mxu1 %v3549_v14  ;;  %v4379_v14 = vld [vmem:[#allocation7 + $0x4b0] sm:$0xf0] }
  0x9f   : > { %1786 = vmatpush.bf16.msrb.mxu2 %v3837_v21  ;;  %v3913_v21 = vor.u32 %v4438_v9, %v3910_v10  ;;  %v3442_v10 = vld [vmem:[#allocation7 + $0x304] sm:$0xf0] }
  0xa0   : > { %1799 = vmatpush.bf16.msrb.mxu3 %v3265_v26  ;;  %v3657_v26 = vor.u32 %v4379_v14, %v3656_v13  ;;  %v4393_v13 = vld [vmem:[#allocation7 + $0x524] sm:$0xf]  ;;  %v3730_v14 = vld [vmem:[#allocation7 + $0x544] sm:$0xf0]  ;;  %v3445_v19 = vor.u32 %v4321_v7, %v3442_v10 }
  0xa1   : > { %1761 = vmatpush.bf16.msrb.mxu0 %v3225_v22  ;;  %v4357_v22 = vld [vmem:[#allocation7 + $0x404] sm:$0xf]  ;;  %v3846_v10 = vld [vmem:[#allocation7 + $0x624] sm:$0xf0] }
  0xa2   : > { %1774 = vmatpush.bf16.msrb.mxu1 %v3513_v27  ;;  %v4348_v27 = vld [vmem:[#allocation7 + $0x3bc] sm:$0xf]  ;;  %v3589_v30 = vor.u32 %v4357_v22, %v3586_v23  ;;  %v3733_v22 = vor.u32 %v4393_v13, %v3730_v14  ;;  %v3406_v23 = vld [vmem:[#allocation7 + $0x2bc] sm:$0xf0]  ;;  %v3594_v13 = vld [vmem:[#allocation7 + $0x42c] sm:$0xf0] }
  0xa3   : > { %1787 = vmatpush.bf16.msrb.mxu2 %v3801_v33  ;;  %v3592_v33 = vld [vmem:[#allocation7 + $0x408] sm:$0xf]  ;;  %v3553_v44 = vor.u32 %v4348_v27, %v3550_v28  ;;  %v3694_v27 = vld [vmem:[#allocation7 + $0x4fc] sm:$0xf0]  ;;  %v3409_v31 = vor.u32 %v4312_v20, %v3406_v23 }
  0xa4   : > { %1800 = vmatpush.bf16.msrb.mxu3 %v3229_v38  ;;  %v4299_v38 = vld [vmem:[#allocation7 + $0x230] sm:$0xf0]  ;;  %v3810_v23 = vld [vmem:[#allocation7 + $0x5dc] sm:$0xf0] }
  0xa5   : > { %1762 = vmatpush.bf16.msrb.mxu0 %v3189_v34  ;;  %v3877_v34 = vor.u32 %v4429_v24, %v3874_v25  ;;  %v3341_v41 = vor.u32 %v4299_v38, %v3340_v37  ;;  %v3448_v24 = vld [vmem:[#allocation7 + $0x2e8] sm:$0xf]  ;;  %v4326_v25 = vld [vmem:[#allocation7 + $0x308] sm:$0xf0]  ;;  %v3412_v37 = vld [vmem:[#allocation7 + $0x2a0] sm:$0xf] }
  0xa6   : > { %1775 = vmatpush.bf16.msrb.mxu1 %v3477_v39  ;;  %v4420_v39 = vld [vmem:[#allocation7 + $0x5fc] sm:$0xf]  ;;  %v4317_v38 = vld [vmem:[#allocation7 + $0x2c0] sm:$0xf0] }
  0xa7   : > { %1788 = vmatpush.bf16.msrb.mxu2 %v3765_v45  ;;  %v4339_v45 = vld [vmem:[#allocation7 + $0x374] sm:$0xf]  ;;  %v3841_v47 = vor.u32 %v4420_v39, %v3838_v40  ;;  %v3658_v39 = vld [vmem:[#allocation7 + $0x4b4] sm:$0xf0] }
  0xa8   : > { %1801 = vmatpush.bf16.msrb.mxu3 %v3193_v50  ;;  %v4353_v50 = vld [vmem:[#allocation7 + $0x3e0] sm:$0xf0]  ;;  %v3517_v56 = vor.u32 %v4339_v45, %v3514_v48  ;;  %v3376_v48 = vld [vmem:[#allocation7 + $0x258] sm:$0xf] }
  0xa9   : > { %1763 = vmatpush.bf16.msrb.mxu0 %v3153_v46  ;;  %v3593_v46 = vor.u32 %v4362_v36, %v3592_v33  ;;  %v3370_v33 = vld [vmem:[#allocation7 + $0x274] sm:$0xf0]  ;;  %v4375_v36 = vld [vmem:[#allocation7 + $0x494] sm:$0xf] }
  0xaa   : > { %1776 = vmatpush.bf16.msrb.mxu1 %v3441_v51  ;;  %v4411_v51 = vld [vmem:[#allocation7 + $0x5b4] sm:$0xf]  ;;  %v3373_v45 = vor.u32 %v4303_v32, %v3370_v33  ;;  %v4286_v32 = vld [vmem:[#allocation7 + $0x1cc] sm:$0xf] }
  0xab   : > { %1789 = vmatpush.bf16.msrb.mxu2 %v3729_v58  ;;  %v3557_v58 = vor.u32 %v4353_v50, %v3556_v49  ;;  %v4308_v49 = vld [vmem:[#allocation7 + $0x278] sm:$0xf0] }
  0xac   : > { %1802 = vmatpush.bf16.msrb.mxu3 %v3157_v0  ;;  %v4402_v0 = vld [vmem:[#allocation7 + $0x56c] sm:$0xf] }
  0xad   : > { %1764 = vmatpush.bf16.msrb.mxu0 %v3117_v59  ;;  %v3805_v59 = vor.u32 %v4411_v51, %v3802_v52  ;;  %v4439_v51 = vld [vmem:[#allocation7 + $0x694] sm:$0xf]  ;;  %v3918_v52 = vld [vmem:[#allocation7 + $0x6b4] sm:$0xf0] }
  0xae   : > { %1777 = vmatpush.bf16.msrb.mxu1 %v3405_v1  ;;  %v3766_v1 = vld [vmem:[#allocation7 + $0x58c] sm:$0xf0]  ;;  %v3921_v61 = vor.u32 %v4439_v51, %v3918_v52  ;;  %v4331_v52 = vld [vmem:[#allocation7 + $0x334] sm:$0xf] }
  0xaf   : > { %1790 = vmatpush.bf16.msrb.mxu2 %v3693_v11  ;;  %v3769_v9 = vor.u32 %v4402_v0, %v3766_v1  ;;  %v3484_v11 = vld [vmem:[#allocation7 + $0x330] sm:$0xf]  ;;  %v4430_v0 = vld [vmem:[#allocation7 + $0x64c] sm:$0xf] }
  0xb0   : > { %1803 = vmatpush.bf16.msrb.mxu3 %v3121_v16  ;;  %v3233_v16 = vor.u32 %v4272_v5, %v3232_v4  ;;  %v3882_v1 = vld [vmem:[#allocation7 + $0x66c] sm:$0xf0]  ;;  %v3844_v4 = vld [vmem:[#allocation7 + $0x600] sm:$0xf]  ;;  %v4425_v5 = vld [vmem:[#allocation7 + $0x620] sm:$0xf0] }
  0xb1   : > { %1765 = vmatpush.bf16.msrb.mxu0 %v3081_v12  ;;  %v4335_v12 = vld [vmem:[#allocation7 + $0x350] sm:$0xf0]  ;;  %v3885_v7 = vor.u32 %v4430_v0, %v3882_v1  ;;  %v3738_v51 = vld [vmem:[#allocation7 + $0x54c] sm:$0xf0]  ;;  %v3234_v1 = vld [vmem:[#allocation7 + $0x15c] sm:$0xf0] }
  0xb2   : > { %1778 = vmatpush.bf16.msrb.mxu1 %v3369_v18  ;;  %v4263_v18 = vld [vmem:[#allocation7 + $0x110] sm:$0xf0] }
  0xb3   : > { %1791 = vmatpush.bf16.msrb.mxu2 %v3657_v26  ;;  %v4384_v26 = vld [vmem:[#allocation7 + $0x4dc] sm:$0xf] }
  0xb4   : > { %1766 = vmatmul.bf16.vlgmr.msrb.gmra.mxu0 %v4927_v63  ;;  %1804 = vmatpush.bf16.msrb.mxu3 %v3085_v29  ;;  %v3160_v29 = vld [vmem:[#allocation7 + $0xa8] sm:$0xf] }
  0xb5   : > { %1810 = vmatpush.bf16.msra.mxu0 %v3625_v17  ;;  %1779 = vmatmul.bf16.vlgmr.msrb.gmra.mxu1 %v4935_v15  ;;  %v3196_v17 = vld [vmem:[#allocation7 + $0xf0] sm:$0xf] }
  0xb6   : > { %1823 = vmatpush.bf16.msra.mxu1 %v3913_v21  ;;  %1792 = vmatmul.bf16.vlgmr.msrb.gmra.mxu2 %v4930_v3  ;;  %v3485_v21 = vor.u32 %v4335_v12, %v3484_v11  ;;  %v3197_v28 = vor.u32 %v4263_v18, %v3196_v17  ;;  %v4358_v12 = vld [vmem:[#allocation7 + $0x40c] sm:$0xf]  ;;  %v3808_v17 = vld [vmem:[#allocation7 + $0x5b8] sm:$0xf]  ;;  %v4416_v18 = vld [vmem:[#allocation7 + $0x5d8] sm:$0xf0] }
  0xb7   : > { %1805 = vmatmul.bf16.vlgmr.msrb.gmra.mxu3 %v4927_v63  ;;  %1836 = vmatpush.bf16.msra.mxu2 %v3341_v41  ;;  %v3916_v41 = vld [vmem:[#allocation7 + $0x690] sm:$0xf]  ;;  %v3597_v14 = vor.u32 %v4358_v12, %v3594_v13  ;;  %v3809_v20 = vor.u32 %v4416_v18, %v3808_v17  ;;  %v4380_v12 = vld [vmem:[#allocation7 + $0x4b8] sm:$0xf0]  ;;  %v3198_v17 = vld [vmem:[#allocation7 + $0x114] sm:$0xf0] }
  0xb8   : > { %1849 = vmatpush.bf16.msra.mxu3 %v3629_v35  ;;  %v3697_v35 = vor.u32 %v4384_v26, %v3694_v27  ;;  %v3917_v50 = vor.u32 %v4443_v42, %v3916_v41  ;;  %v4349_v27 = vld [vmem:[#allocation7 + $0x3c4] sm:$0xf]  ;;  %v4340_v41 = vld [vmem:[#allocation7 + $0x37c] sm:$0xf]  ;;  %v3522_v42 = vld [vmem:[#allocation7 + $0x39c] sm:$0xf0] }
  0xb9   : > { %1811 = vmatpush.bf16.msra.mxu0 %v3589_v30  ;;  %v4254_v30 = vld [vmem:[#allocation7 + $0xc8] sm:$0xf0]  ;;  %v4376_v18 = vld [vmem:[#allocation7 + $0x49c] sm:$0xf] }
  0xba   : > { %1824 = vmatpush.bf16.msra.mxu1 %v3877_v34  ;;  %v3449_v34 = vor.u32 %v4326_v25, %v3448_v24  ;;  %v3161_v40 = vor.u32 %v4254_v30, %v3160_v29  ;;  %v3772_v30 = vld [vmem:[#allocation7 + $0x570] sm:$0xf] }
  0xbb   : > { %1837 = vmatpush.bf16.msra.mxu2 %v3305_v53 }
  0xbc   : > { %1850 = vmatpush.bf16.msra.mxu3 %v3593_v46  ;;  %v3413_v46 = vor.u32 %v4317_v38, %v3412_v37  ;;  %v4403_v37 = vld [vmem:[#allocation7 + $0x574] sm:$0xf]  ;;  %v3774_v38 = vld [vmem:[#allocation7 + $0x594] sm:$0xf0] }
  0xbd   : > { %1812 = vmatpush.bf16.msra.mxu0 %v3553_v44  ;;  %v4245_v44 = vld [vmem:[#allocation7 + $0x80] sm:$0xf0] }
  0xbe   : > { %1825 = vmatpush.bf16.msra.mxu1 %v3841_v47  ;;  %v3661_v47 = vor.u32 %v4375_v36, %v3658_v39  ;;  %v3125_v53 = vor.u32 %v4245_v44, %v3124_v43  ;;  %v3306_v36 = vld [vmem:[#allocation7 + $0x1ec] sm:$0xf0]  ;;  %v3736_v43 = vld [vmem:[#allocation7 + $0x528] sm:$0xf]  ;;  %v3525_v44 = vor.u32 %v4340_v41, %v3522_v42  ;;  %v4232_v41 = vld [vmem:[#allocation7 + $0x1c] sm:$0xf] }
  0xbf   : > { %1838 = vmatpush.bf16.msra.mxu2 %v3269_v2  ;;  %v3309_v39 = vor.u32 %v4286_v32, %v3306_v36  ;;  %v3378_v32 = vld [vmem:[#allocation7 + $0x27c] sm:$0xf0]  ;;  %v3126_v36 = vld [vmem:[#allocation7 + $0x84] sm:$0xf0] }
  0xc0   : > { %1851 = vmatpush.bf16.msra.mxu3 %v3557_v58  ;;  %v3377_v58 = vor.u32 %v4308_v49, %v3376_v48  ;;  %v3090_v42 = vld [vmem:[#allocation7 + $0x3c] sm:$0xf0] }
  0xc1   : > { %1813 = vmatpush.bf16.msra.mxu0 %v3517_v56  ;;  %v3088_v56 = vld [vmem:[#allocation7 + $0x18] sm:$0xf] }
  0xc2   : > { %1826 = vmatpush.bf16.msra.mxu1 %v3805_v59  ;;  %v4367_v59 = vld [vmem:[#allocation7 + $0x454] sm:$0xf]  ;;  %v3089_v2 = vor.u32 %v4236_v57, %v3088_v56  ;;  %v3486_v57 = vld [vmem:[#allocation7 + $0x354] sm:$0xf0] }
  0xc3   : > { %1839 = vmatpush.bf16.msra.mxu2 %v3233_v16 }
  0xc4   : > { %1852 = vmatpush.bf16.msra.mxu3 %v3521_v8  ;;  %v3845_v8 = vor.u32 %v4425_v5, %v3844_v4  ;;  %v3702_v4 = vld [vmem:[#allocation7 + $0x504] sm:$0xf0] }
  0xc5   : > { %1814 = vmatpush.bf16.msra.mxu0 %v3481_v6  ;;  %v3633_v6 = vor.u32 %v4367_v59, %v3630_v60  ;;  %v3700_v59 = vld [vmem:[#allocation7 + $0x4e0] sm:$0xf]  ;;  %v4389_v60 = vld [vmem:[#allocation7 + $0x500] sm:$0xf0] }
  0xc6   : > { %1827 = vmatpush.bf16.msra.mxu1 %v3769_v9  ;;  %v4421_v9 = vld [vmem:[#allocation7 + $0x604] sm:$0xf]  ;;  %v3701_v5 = vor.u32 %v4389_v60, %v3700_v59  ;;  %v3816_v60 = vld [vmem:[#allocation7 + $0x5c0] sm:$0xf] }
  0xc7   : > { %1840 = vmatpush.bf16.msra.mxu2 %v3197_v28  ;;  %v3849_v11 = vor.u32 %v4421_v9, %v3846_v10  ;;  %v3558_v28 = vld [vmem:[#allocation7 + $0x3e4] sm:$0xf0] }
  0xc8   : > { %1853 = vmatpush.bf16.msra.mxu3 %v3485_v21  ;;  %v3342_v21 = vld [vmem:[#allocation7 + $0x234] sm:$0xf0]  ;;  %v3561_v29 = vor.u32 %v4349_v27, %v3558_v28  ;;  %v4250_v28 = vld [vmem:[#allocation7 + $0xac] sm:$0xf] }
  0xc9   : > { %1815 = vmatpush.bf16.msra.mxu0 %v3445_v19  ;;  %v4295_v19 = vld [vmem:[#allocation7 + $0x214] sm:$0xf] }
  0xca   : > { %1828 = vmatpush.bf16.msra.mxu1 %v3733_v22  ;;  %v4412_v22 = vld [vmem:[#allocation7 + $0x5bc] sm:$0xf]  ;;  %v3345_v25 = vor.u32 %v4295_v19, %v3342_v21  ;;  %v4313_v21 = vld [vmem:[#allocation7 + $0x2a4] sm:$0xf] }
  0xcb   : > { %1841 = vmatpush.bf16.msra.mxu2 %v3161_v40  ;;  %v3813_v26 = vor.u32 %v4412_v22, %v3810_v23  ;;  %v3777_v40 = vor.u32 %v4403_v37, %v3774_v38  ;;  %v3414_v22 = vld [vmem:[#allocation7 + $0x2c4] sm:$0xf0] }
  0xcc   : > { %1854 = vmatpush.bf16.msra.mxu3 %v3449_v34  ;;  %v3417_v27 = vor.u32 %v4313_v21, %v3414_v22 }
  0xcd   : > { %1816 = vmatpush.bf16.msra.mxu0 %v3409_v31  ;;  %v4407_v31 = vld [vmem:[#allocation7 + $0x590] sm:$0xf0] }
  0xce   : > { %1829 = vmatpush.bf16.msra.mxu1 %v3697_v35  ;;  %v3773_v35 = vor.u32 %v4407_v31, %v3772_v30  ;;  %v4304_v31 = vld [vmem:[#allocation7 + $0x25c] sm:$0xf] }
  0xcf   : > { %1842 = vmatpush.bf16.msra.mxu2 %v3125_v53 }
  0xd0   : > { %1855 = vmatpush.bf16.msra.mxu3 %v3413_v46  ;;  %v4277_v46 = vld [vmem:[#allocation7 + $0x184] sm:$0xf] }
  0xd1   : > { %1817 = vmatpush.bf16.msra.mxu0 %v3373_v45  ;;  %v1611_v16 = vpop.f32.mrf.mxu0  ;;  %v4398_v45 = vld [vmem:[#allocation7 + $0x548] sm:$0xf0] }
  0xd2   : > { %1830 = vmatpush.bf16.msra.mxu1 %v3661_v47  ;;  %v1624_v24 = vpop.f32.mrf.mxu1  ;;  %v3270_v47 = vld [vmem:[#allocation7 + $0x1a4] sm:$0xf0]  ;;  %v3737_v49 = vor.u32 %v4398_v45, %v3736_v43 }
  0xd3   : > { %1843 = vmatpush.bf16.msra.mxu2 %v3089_v2  ;;  %v1625_v33 = vadd.f32 %v1624_v24, %v1611_v16  ;;  %v3273_v55 = vor.u32 %v4277_v46, %v3270_v47  ;;  %v4385_v2 = vld [vmem:[#allocation7 + $0x4e4] sm:$0xf]  ;;  %v4259_v16 = vld [vmem:[#allocation7 + $0xf4] sm:$0xf] }
  0xd4   : > { %1818 = vmatmul.bf16.vlgmr.msra.gmra.mxu0 %v4935_v15  ;;  %1856 = vmatpush.bf16.msra.mxu3 %v3377_v58  ;;  %v3489_v58 = vor.u32 %v4331_v52, %v3486_v57  ;;  %v3705_v13 = vor.u32 %v4385_v2, %v3702_v4  ;;  %v4444_v52 = vld [vmem:[#allocation7 + $0x6b8] sm:$0xf0]  ;;  %v3852_v57 = vld [vmem:[#allocation7 + $0x608] sm:$0xf] }
  0xd5   : > { %1862 = vmatpush.bf16.msrb.mxu0 %v3917_v50  ;;  %1831 = vmatmul.bf16.vlgmr.msra.gmra.mxu1 %v4930_v3  ;;  %v4394_v50 = vld [vmem:[#allocation7 + $0x52c] sm:$0xf] }
  0xd6   : > { %1844 = vmatmul.bf16.vlgmr.msra.gmra.mxu2 %v4927_v63  ;;  %1875 = vmatpush.bf16.msrb.mxu1 %v3345_v25  ;;  %v3741_v56 = vor.u32 %v4394_v50, %v3738_v51  ;;  %v3201_v25 = vor.u32 %v4259_v16, %v3198_v17 }
  0xd7   : > { %1888 = vmatpush.bf16.msrb.mxu2 %v3633_v6  ;;  %1857 = vmatmul.bf16.vlgmr.msra.gmra.mxu3 %v4935_v15  ;;  %v4322_v6 = vld [vmem:[#allocation7 + $0x2ec] sm:$0xf] }
  0xd8   : > { %1901 = vmatpush.bf16.msrb.mxu3 %v3921_v61  ;;  %v4268_v61 = vld [vmem:[#allocation7 + $0x13c] sm:$0xf] }
  0xd9   : > { %1863 = vmatpush.bf16.msrb.mxu0 %v3881_v62  ;;  %v1637_v48 = vpop.f32.mrf.mxu2  ;;  %v1613_v54 = vpop.f32.mrf.mxu0  ;;  %v3237_v10 = vor.u32 %v4268_v61, %v3234_v1  ;;  %v4417_v61 = vld [vmem:[#allocation7 + $0x5e0] sm:$0xf0] }
  0xda   : > { %v4955_v34 = vpop.f32.mrf.mxu3  ;;  %v1638_v53 = vadd.f32 %v1637_v48, %v1625_v33  ;;  %1876 = vmatpush.bf16.msrb.mxu1 %v3309_v39  ;;  %v1626_v0 = vpop.f32.mrf.mxu1  ;;  %v3381_v33 = vor.u32 %v4304_v31, %v3378_v32  ;;  %v3817_v4 = vor.u32 %v4417_v61, %v3816_v60 }
  0xdb   : > { %1889 = vmatpush.bf16.msrb.mxu2 %v3597_v14 }
  0xdc   : > { %1902 = vmatpush.bf16.msrb.mxu3 %v3885_v7  ;;  %v4957_v62 = vpack.c.bf16 %v1638_v53, %v1638_v53  ;;  %v3450_v7 = vld [vmem:[#allocation7 + $0x30c] sm:$0xf0] }
  0xdd   : > { %1864 = vmatpush.bf16.msrb.mxu0 %v3845_v8  ;;  %v3453_v14 = vor.u32 %v4322_v6, %v3450_v7  ;;  %v3888_v53 = vld [vmem:[#allocation7 + $0x650] sm:$0xf]  ;;  %v4408_v6 = vld [vmem:[#allocation7 + $0x598] sm:$0xf0] }
  0xde   : > { %v2016_v9 = vunpack.c.l.b16 %v4957_v62  ;;  %1877 = vmatpush.bf16.msrb.mxu1 %v3273_v55  ;;  %v4435_v55 = vld [vmem:[#allocation7 + $0x670] sm:$0xf0] }
  0xdf   : > { %1890 = vmatpush.bf16.msrb.mxu2 %v3561_v29  ;;  %v3162_v29 = vld [vmem:[#allocation7 + $0xcc] sm:$0xf0] }
  0xe0   : > { %1903 = vmatpush.bf16.msrb.mxu3 %v3849_v11  ;;  %v3664_v11 = vld [vmem:[#allocation7 + $0x498] sm:$0xf]  ;;  %v2017_v19 = vpack.c.b16 %v2016_v9, %v2016_v9  ;;  %v3165_v30 = vor.u32 %v4250_v28, %v3162_v29  ;;  %v4399_v9 = vld [vmem:[#allocation7 + $0x550] sm:$0xf0] }
  0xe1   : > { %1865 = vmatpush.bf16.msrb.mxu0 %v3809_v20  ;;  %v3666_v20 = vld [vmem:[#allocation7 + $0x4bc] sm:$0xf0]  ;;  %v1639_v23 = vpop.f32.mrf.mxu2  ;;  %v3665_v24 = vor.u32 %v4380_v12, %v3664_v11 }
  0xe2   : > { %v1652_v8 = vpop.f32.mrf.mxu3  ;;  %2018 = vrot.lane.b32.xlu1 %v2017_v19, %s4785_s25  ;;  %1878 = vmatpush.bf16.msrb.mxu1 %v3237_v10  ;;  %v4390_v19 = vld [vmem:[#allocation7 + $0x508] sm:$0xf0]  ;;  %v3672_v23 = vld [vmem:[#allocation7 + $0x4a0] sm:$0xf] }
  0xe3   : > { %1891 = vmatpush.bf16.msrb.mxu2 %v3525_v44  ;;  %v3093_v44 = vor.u32 %v4232_v41, %v3090_v42  ;;  %v3744_v8 = vld [vmem:[#allocation7 + $0x530] sm:$0xf] }
  0xe4   : > { %1904 = vmatpush.bf16.msrb.mxu3 %v3813_v26  ;;  %v3669_v26 = vor.u32 %v4376_v18, %v3666_v20  ;;  %v3745_v16 = vor.u32 %v4399_v9, %v3744_v8  ;;  %v3708_v18 = vld [vmem:[#allocation7 + $0x4e8] sm:$0xf] }
  0xe5   : > { %1866 = vmatpush.bf16.msrb.mxu0 %v3773_v35  ;;  %v4241_v35 = vld [vmem:[#allocation7 + $0x64] sm:$0xf]  ;;  %v3709_v21 = vor.u32 %v4390_v19, %v3708_v18 }
  0xe6   : > { %1879 = vmatpush.bf16.msrb.mxu1 %v3201_v25  ;;  %v3129_v37 = vor.u32 %v4241_v35, %v3126_v36 }
  0xe7   : > { %1892 = vmatpush.bf16.msrb.mxu2 %v3489_v58  ;;  %v4426_v58 = vld [vmem:[#allocation7 + $0x628] sm:$0xf0] }
  0xe8   : > { %1905 = vmatpush.bf16.msrb.mxu3 %v3777_v40  ;;  %v3853_v59 = vor.u32 %v4426_v58, %v3852_v57 }
  0xe9   : > { %1867 = vmatpush.bf16.msrb.mxu0 %v3737_v49 }
  0xea   : > { %1880 = vmatpush.bf16.msrb.mxu1 %v3165_v30 }
  0xeb   : > { %1893 = vmatpush.bf16.msrb.mxu2 %v3453_v14 }
  0xec   : > { %1906 = vmatpush.bf16.msrb.mxu3 %v3741_v56  ;;  %v3889_v56 = vor.u32 %v4435_v55, %v3888_v53 }
  0xed   : > { %1868 = vmatpush.bf16.msrb.mxu0 %v3701_v5  ;;  %v3780_v5 = vld [vmem:[#allocation7 + $0x578] sm:$0xf] }
  0xee   : > { %1881 = vmatpush.bf16.msrb.mxu1 %v3129_v37  ;;  %v3781_v7 = vor.u32 %v4408_v6, %v3780_v5 }
  0xef   : > { %1894 = vmatpush.bf16.msrb.mxu2 %v3417_v27 }
  0xf0   : > { %1907 = vmatpush.bf16.msrb.mxu3 %v3705_v13 }
  0xf1   : > { %1869 = vmatpush.bf16.msrb.mxu0 %v3665_v24  ;;  %v1663_v38 = vpop.f32.mrf.mxu0  ;;  %v4381_v24 = vld [vmem:[#allocation7 + $0x4c0] sm:$0xf0] }
  0xf2   : > { %v1664_v39 = vadd.f32 %v1663_v38, %v4955_v34  ;;  %v1676_v40 = vpop.f32.mrf.mxu1  ;;  %1882 = vmatpush.bf16.msrb.mxu1 %v3093_v44  ;;  %v3924_v34 = vld [vmem:[#allocation7 + $0x698] sm:$0xf]  ;;  %v3673_v27 = vor.u32 %v4381_v24, %v3672_v23 }
  0xf3   : > { %1895 = vmatpush.bf16.msrb.mxu2 %v3381_v33  ;;  %v3925_v54 = vor.u32 %v4444_v52, %v3924_v34 }
  0xf4   : > { %1908 = vmatpush.bf16.msrb.mxu3 %v3669_v26  ;;  %1870 = vmatmul.bf16.vlgmr.msrb.gmra.mxu0 %v4930_v3  ;;  %v4965_v43 = vadd.f32 %v1676_v40, %v1664_v39 }
  0xf5   : > { %1883 = vmatmul.bf16.vlgmr.msrb.gmra.mxu1 %v4927_v63 }
  0xf6   : > { %1896 = vmatmul.bf16.vlgmr.msrb.gmra.mxu2 %v4935_v15 }
  0xf7   : > { %1909 = vmatmul.bf16.vlgmr.msrb.gmra.mxu3 %v4930_v3  ;;  %1940 = vmatpush.bf16.msra.mxu2 %v3925_v54 }
  0xf9   : > { %v1689_v45 = vpop.f32.mrf.mxu2  ;;  %v1665_v47 = vpop.f32.mrf.mxu0 }
  0xfa   : > { %v1702_v46 = vpop.f32.mrf.mxu3  ;;  %v1678_v49 = vpop.f32.mrf.mxu1 }
  0xfb   : > { %v1703_v48 = vadd.f32 %v1702_v46, %v1689_v45  ;;  %1941 = vmatpush.bf16.msra.mxu2 %v3889_v56 }
  0xff   : > { %1942 = vmatpush.bf16.msra.mxu2 %v3853_v59 }
 0x101   : > { %v1691_v50 = vpop.f32.mrf.mxu2 }
 0x102   : > { %v1704_v51 = vpop.f32.mrf.mxu3 }
 0x103   : > { %1943 = vmatpush.bf16.msra.mxu2 %v3817_v4 }
 0x107   : > { %1944 = vmatpush.bf16.msra.mxu2 %v3781_v7 }
 0x10b   : > { %1945 = vmatpush.bf16.msra.mxu2 %v3745_v16 }
 0x10f   : > { %1946 = vmatpush.bf16.msra.mxu2 %v3709_v21 }
 0x111   : > { %v1715_v0 = vpop.f32.mrf.mxu0 }
 0x112   : > { %v1716_v1 = vadd.f32 %v1715_v0, %v1703_v48  ;;  %v1728_v2 = vpop.f32.mrf.mxu1 }
 0x113   : > { %1947 = vmatpush.bf16.msra.mxu2 %v3673_v27  ;;  %v3312_v27 = vld [vmem:[#allocation7 + $0x1d0] sm:$0xf] }
 0x114   : > { %v2201_v49 = vpack.c.bf16 %v1716_v1, %v1716_v1 }
 0x116   : > { %1948 = vmatmul.bf16.vlgmr.msra.gmra.mxu2 %v4930_v3  ;;  %v2256_v52 = vunpack.c.l.b16 %v2201_v49 }
 0x118   : > { %v2257_v54 = vpack.c.b16 %v2256_v52, %v2256_v52  ;;  %v3636_v52 = vld [vmem:[#allocation7 + $0x458] sm:$0xf] }
 0x119   : > { %v1741_v10 = vpop.f32.mrf.mxu2  ;;  %v1717_v13 = vpop.f32.mrf.mxu0 }
 0x11a   : > { %v1742_v11 = vadd.f32 %v1741_v10, %v1728_v2  ;;  %v1754_v12 = vpop.f32.mrf.mxu3  ;;  %v1730_v14 = vpop.f32.mrf.mxu1 }
 0x11c   : > { %v1755_v17 = vadd.f32 %v1754_v12, %v1742_v11  ;;  %v1953_v11 = vlaneseq }
 0x11e   : > { %v4968_v20 = vpack.c.bf16 %v1755_v17, %v1755_v17  ;;  %v1954_v12 = vshrl.u32 %v1953_v11, 7  ;;  %v1956_v13 = vand.u32 127, %v1953_v11 }
 0x120   : > { %v1966_v22 = vsel %vm1961_vm0, %v4968_v20, 0  ;;  %vm4987_vm2 = vcmp.le.s32.totalorder %v1956_v13, %v1954_v12  ;;  %v2021_v23 = vunpack.c.l.b16 %v4968_v20  ;;  %v4264_v20 = vld [vmem:[#allocation7 + $0x118] sm:$0xf0] }
 0x121   : > { %v1743_v25 = vpop.f32.mrf.mxu2  ;;  %1975 = vmatpush.bf16.xpose.msra.mxu3 %v1966_v22 }
 0x122   : > { %v1756_v26 = vpop.f32.mrf.mxu3  ;;  %v2022_v24 = vpack.c.b16 %v2021_v23, %v2021_v23  ;;  %v3348_v25 = vld [vmem:[#allocation7 + $0x218] sm:$0xf]  ;;  %v2081_v23 = vpack.c.bf16 %v4965_v43, %v4965_v43 }
 0x123   : > { %v4300_v26 = vld [vmem:[#allocation7 + $0x238] sm:$0xf0] }
 0x128   : > { %3926 = vmatmul.msk.bf16.vlgmr.msra.gmra.mxu3 %vm1961_vm0, %v4957_v62 }
 0x131   : > { %v1767_v28 = vpop.f32.mrf.mxu0 }
 0x132   : > { %v1780_v29 = vpop.f32.mrf.mxu1 }
 0x133   : > { %v1781_v30 = vadd.f32 %v1780_v29, %v1767_v28  ;;  %v3349_v28 = vor.u32 %v4300_v26, %v3348_v25  ;;  %v4291_v29 = vld [vmem:[#allocation7 + $0x1f0] sm:$0xf0] }
 0x135   : > { %1914 = vmatpush.bf16.msra.mxu0 %v3349_v28  ;;  %v4309_v28 = vld [vmem:[#allocation7 + $0x280] sm:$0xf0] }
 0x139   : > { %v1769_v31 = vpop.f32.mrf.mxu0  ;;  %v1793_v33 = vpop.f32.mrf.mxu2 }
 0x13a   : > { %v1782_v32 = vpop.f32.mrf.mxu1  ;;  %v1794_v35 = vadd.f32 %v1793_v33, %v1781_v30  ;;  %v1806_v36 = vpop.f32.mrf.mxu3  ;;  %v3313_v30 = vor.u32 %v4291_v29, %v3312_v27  ;;  %v3276_v31 = vld [vmem:[#allocation7 + $0x188] sm:$0xf]  ;;  %v3384_v27 = vld [vmem:[#allocation7 + $0x260] sm:$0xf]  ;;  %v2136_v29 = vunpack.c.l.b16 %v2081_v23 }
 0x13b   : > { %v4282_v32 = vld [vmem:[#allocation7 + $0x1a8] sm:$0xf0] }
 0x13c   : > { %v2082_v37 = vpack.c.bf16 %v1794_v35, %v1794_v35  ;;  %1915 = vmatpush.bf16.msra.mxu0 %v3313_v30  ;;  %v3277_v33 = vor.u32 %v4282_v32, %v3276_v31  ;;  %v3240_v35 = vld [vmem:[#allocation7 + $0x140] sm:$0xf]  ;;  %v3385_v30 = vor.u32 %v4309_v28, %v3384_v27  ;;  %v2137_v31 = vpack.c.b16 %v2136_v29, %v2136_v29 }
 0x13e   : > { %v2141_v38 = vunpack.c.l.b16 %v2082_v37  ;;  %v2088_v61 = vsel %vm1961_vm0, %v2082_v37, 0 }
 0x140   : > { %v2142_v39 = vpack.c.b16 %v2141_v38, %v2141_v38  ;;  %1916 = vmatpush.bf16.msra.mxu0 %v3277_v33  ;;  %v3204_v38 = vld [vmem:[#allocation7 + $0xf8] sm:$0xf] }
 0x141   : > { %v1795_v40 = vpop.f32.mrf.mxu2 }
 0x142   : > { %2143 = vrot.lane.b32.xlu1 %v2142_v39, %s4785_s25  ;;  %v1808_v41 = vpop.f32.mrf.mxu3  ;;  %v3205_v39 = vor.u32 %v4264_v20, %v3204_v38 }
 0x151   : > { %v1819_v42 = vpop.f32.mrf.mxu0 }
 0x152   : > { %v1820_v44 = vadd.f32 %v1819_v42, %v1806_v36  ;;  %v1832_v62 = vpop.f32.mrf.mxu1  ;;  %v4273_v36 = vld [vmem:[#allocation7 + $0x160] sm:$0xf0]  ;;  %v3168_v42 = vld [vmem:[#allocation7 + $0xb0] sm:$0xf] }
 0x153   : > { %v3241_v37 = vor.u32 %v4273_v36, %v3240_v35 }
 0x154   : > { %v1833_v45 = vadd.f32 %v1832_v62, %v1820_v44  ;;  %v4255_v44 = vld [vmem:[#allocation7 + $0xd0] sm:$0xf0] }
 0x155   : > { %1917 = vmatpush.bf16.msra.mxu0 %v3241_v37  ;;  %v3169_v62 = vor.u32 %v4255_v44, %v3168_v42 }
 0x156   : > { %v2202_v3 = vpack.c.bf16 %v1833_v45, %v1833_v45  ;;  %v3132_v45 = vld [vmem:[#allocation7 + $0x68] sm:$0xf] }
 0x158   : > { %v2208_v46 = vsel %vm1961_vm0, %v2202_v3, 0  ;;  %v2261_v47 = vunpack.c.l.b16 %v2202_v3  ;;  %v4246_v3 = vld [vmem:[#allocation7 + $0x88] sm:$0xf0] }
 0x159   : > { %2217 = vmatpush.bf16.xpose.msrb.mxu2 %v2208_v46  ;;  %v1821_v48 = vpop.f32.mrf.mxu0  ;;  %v1845_v53 = vpop.f32.mrf.mxu2  ;;  %1918 = vmatpush.bf16.msra.mxu0 %v3205_v39  ;;  %v3133_v46 = vor.u32 %v4246_v3, %v3132_v45 }
 0x15a   : > { %v2262_v50 = vpack.c.b16 %v2261_v47, %v2261_v47  ;;  %v1834_v51 = vpop.f32.mrf.mxu1  ;;  %v1858_v34 = vpop.f32.mrf.mxu3  ;;  %v3096_v47 = vld [vmem:[#allocation7 + $0x20] sm:$0xf]  ;;  %v4237_v48 = vld [vmem:[#allocation7 + $0x40] sm:$0xf0] }
 0x15b   : > { %v1859_v57 = vadd.f32 %v1858_v34, %v1845_v53  ;;  %v4372_v53 = vld [vmem:[#allocation7 + $0x478] sm:$0xf0] }
 0x15c   : > { %2263 = vrot.lane.b32.xlu1 %v2262_v50, %s4785_s25 }
 0x15d   : > { %1919 = vmatpush.bf16.msra.mxu0 %v3169_v62 }
 0x160   : > { %3934 = vmatmul.msk.bf16.vlgmr.msrb.gmra.mxu2 %vm1961_vm0, %v2201_v49  ;;  %v3097_v49 = vor.u32 %v4237_v48, %v3096_v47 }
 0x161   : > { %v1847_v56 = vpop.f32.mrf.mxu2  ;;  %1920 = vmatpush.bf16.msra.mxu0 %v3133_v46 }
 0x162   : > { %v1860_v55 = vpop.f32.mrf.mxu3  ;;  %v4363_v56 = vld [vmem:[#allocation7 + $0x430] sm:$0xf0] }
 0x163   : > { %v3637_v55 = vor.u32 %v4372_v53, %v3636_v52 }
 0x164   : > { %2258 = vrot.lane.b32.xlu1 %v2257_v54, %s4785_s25  ;;  %v3600_v54 = vld [vmem:[#allocation7 + $0x410] sm:$0xf] }
 0x165   : > { %1921 = vmatpush.bf16.msra.mxu0 %v3097_v49  ;;  %1927 = vmatpush.bf16.msra.mxu1 %v3637_v55 }
 0x168   : > { %1922 = vmatmul.bf16.vlgmr.msra.gmra.mxu0 %v4927_v63  ;;  %v3528_v63 = vld [vmem:[#allocation7 + $0x380] sm:$0xf] }
 0x171   : > { %v1871_v58 = vpop.f32.mrf.mxu0 }
 0x172   : > { %v1872_v59 = vadd.f32 %v1871_v58, %v1859_v57  ;;  %v1884_v5 = vpop.f32.mrf.mxu1  ;;  %v3601_v57 = vor.u32 %v4363_v56, %v3600_v54  ;;  %v2019_v58 = vpop.permute.xlu1 %2018 }
 0x174   : > { %v4980_v60 = vpack.c.bf16 %v1872_v59, %v1872_v59  ;;  %v3564_v59 = vld [vmem:[#allocation7 + $0x3c8] sm:$0xf]  ;;  %1928 = vmatpush.bf16.msra.mxu1 %v3601_v57 }
 0x176   : > { %v2000_v0 = vsel %vm1998_vm1, %v4980_v60, 0 }
 0x177   : > { %2009 = vmatpush.bf16.msrb.mxu3 %v2000_v0 }
 0x179   : > { %v1873_v2 = vpop.f32.mrf.mxu0  ;;  %v1897_v4 = vpop.f32.mrf.mxu2 }
 0x17a   : > { %v1910_v1 = vpop.f32.mrf.mxu3  ;;  %v1898_v6 = vadd.f32 %v1897_v4, %v1884_v5  ;;  %v1886_v10 = vpop.f32.mrf.mxu1  ;;  %v4345_v4 = vld [vmem:[#allocation7 + $0x3a0] sm:$0xf0] }
 0x17b   : > { %2097 = vmatpush.bf16.xpose.msra.mxu3 %v2088_v61  ;;  %v4354_v61 = vld [vmem:[#allocation7 + $0x3e8] sm:$0xf0]  ;;  %v3529_v5 = vor.u32 %v4345_v4, %v3528_v63 }
 0x17c   : > { %v4985_v7 = vadd.f32 %v1910_v1, %v1898_v6  ;;  %v3565_v2 = vor.u32 %v4354_v61, %v3564_v59  ;;  %v2058_v61 = vunpack.c.l.b16 %v4980_v60 }
 0x17e   : > { %1929 = vmatpush.bf16.msra.mxu1 %v3565_v2  ;;  %v2083_v36 = vpack.c.bf16 %v4985_v7, %v4985_v7  ;;  %v2059_v63 = vpack.c.b16 %v2058_v61, %v2058_v61  ;;  %v4461_v61 = vld [vmem:[#allocation9 + $0x80] sm:$0xf0] }
 0x180   : > { %v2120_v39 = vsel %vm1998_vm1, %v2083_v36, 0 }
 0x181   : > { %v1899_v9 = vpop.f32.mrf.mxu2 }
 0x182   : > { %v1912_v8 = vpop.f32.mrf.mxu3  ;;  %v4336_v9 = vld [vmem:[#allocation7 + $0x358] sm:$0xf0]  ;;  %1930 = vmatpush.bf16.msra.mxu1 %v3529_v5 }
 0x183   : > { %v3492_v8 = vld [vmem:[#allocation7 + $0x338] sm:$0xf] }
 0x184   : > { %v3493_v13 = vor.u32 %v4336_v9, %v3492_v8  ;;  %v2178_v9 = vunpack.c.l.b16 %v2083_v36 }
 0x186   : > { %1931 = vmatpush.bf16.msra.mxu1 %v3493_v13 }
 0x199   : > { %v4994_v19 = vpop.f32.mrf.mxu2 }
 0x1a1   : > { %v1951_v22 = vpop.f32.mrf.mxu2 }
 0x1a2   : > { %v4318_v22 = vld [vmem:[#allocation7 + $0x2c8] sm:$0xf0] }
 0x1ab   : > { %v1977_v16 = vpop.f32.mrf.mxu3 }
 0x1ac   : > { %v1981_v17 = vsel %vm4987_vm2, %v1977_v16, -inf  ;;  %v3456_v16 = vld [vmem:[#allocation7 + $0x2f0] sm:$0xf] }
 0x1ad   : > { %v1983_v18 = vsel %vm1982_vm3, %v1981_v17, -inf }
 0x1ae   : > { %1984 = vmax.xlane.f32.xlu0 %v1983_v18 }
 0x1b3   : > { %v1979_v21 = vpop.f32.mrf.mxu3 }
 0x1b4   : > { %v2144_v6 = vpop.permute.xlu1 %2143  ;;  %v3420_v21 = vld [vmem:[#allocation7 + $0x2a8] sm:$0xf] }
 0x1b5   : > { %v2149_v10 = vsel %vm1961_vm0, %v2144_v6, 0  ;;  %v3421_v26 = vor.u32 %v4318_v22, %v3420_v21 }
 0x1c2   : > { %2023 = vrot.lane.b32.xlu0 %v2022_v24, %s4785_s25 }
 0x1ce   : > { %v2264_v24 = vpop.permute.xlu1 %2263 }
 0x1cf   : > { %v2269_v25 = vsel %vm1961_vm0, %v2264_v24, 0 }
 0x1e3   : > { %v4998_v40 = vpop.f32.mrf.mxu2 }
 0x1e4   : > { %v2223_v7 = vsel %vm4987_vm2, %v4998_v40, -inf }
 0x1e5   : > { %v1923_v43 = vpop.f32.mrf.mxu0  ;;  %v2224_v45 = vsel %vm1982_vm3, %v2223_v7, -inf }
 0x1eb   : > { %v2221_v41 = vpop.f32.mrf.mxu2 }
 0x1ec   : > { %v2259_v41 = vpop.permute.xlu1 %2258 }
 0x1ed   : > { %v1925_v32 = vpop.f32.mrf.mxu0 }
 0x221   : > { %v1985_v50 = vpop.xlane.xlu0 %1984 }
 0x222   : > { %v1986_v51 = vsub.f32 %v1981_v17, %v1985_v50  ;;  %v4327_v17 = vld [vmem:[#allocation7 + $0x310] sm:$0xf0] }
 0x223   : > { %v3457_v18 = vor.u32 %v4327_v17, %v3456_v16 }
 0x224   : > { %v1987_v34 = vmul.f32 1.442695, %v1986_v51 }
 0x225   : > { %1932 = vmatpush.bf16.msra.mxu1 %v3457_v18 }
 0x226   : > { %4593 = vpow2.f32 %v1987_v34 }
 0x229   : > { %1933 = vmatpush.bf16.msra.mxu1 %v3421_v26 }
 0x22c   : > { %v4594_v0 = vpop.eup %4593 }
 0x22d   : > { %v1989_v1 = vsel %vm1982_vm3, %v4594_v0, 0.0  ;;  %1934 = vmatpush.bf16.msra.mxu1 %v3385_v30 }
 0x22e   : > { %1990 = vadd.xlane.f32.xlu2 %v1989_v1 }
 0x230   : > { %1935 = vmatmul.bf16.vlgmr.msra.gmra.mxu1 %v4935_v15 }
 0x234   : > { %v2024_v11 = vpop.permute.xlu0 %2023 }
 0x235   : > { %v2029_v12 = vsel %vm1961_vm0, %v2024_v11, 0 }
 0x236   : > { %2038 = vmatpush.bf16.xpose.msrb.mxu0 %v2029_v12 }
 0x23d   : > { %3928 = vmatmul.msk.bf16.vlgmr.msrb.gmra.mxu0 %vm1961_vm0, %v2019_v58 }
 0x23e   : > { %2158 = vmatpush.bf16.xpose.msra.mxu0 %v2149_v10  ;;  %v2179_v10 = vpack.c.b16 %v2178_v9, %v2178_v9 }
 0x246   : > { %2278 = vmatpush.bf16.xpose.msrb.mxu0 %v2269_v25  ;;  %2138 = vrot.lane.b32.xlu2 %v2137_v31, %s4785_s25 }
 0x2a1   : > { %v1991_v33 = vpop.xlane.xlu2 %1990 }
 0x2a2   : > { %4595 = vrcp.f32 %v1991_v33 }
 0x2a8   : > { %v4596_v35 = vpop.eup %4595 }
 0x2a9   : > { %v1993_v37 = vmul.f32 %v4596_v35, %v4594_v0  ;;  %v2139_v38 = vpop.permute.xlu2 %2138 }
 0x2aa   : > { %3932 = vmatmul.msk.bf16.vlgmr.msra.gmra.mxu0 %vm1961_vm0, %v2139_v38 }
 0x2ab   : > { %v1994_v20 = vpack.c.bf16 %v1993_v37, %v1993_v37 }
 0x2ad   : > { %3927 = vmatmul.msk.bf16.vlgmr.msrb.gmra.mxu3 %vm1982_vm3, %v1994_v20  ;;  %v1936_v3 = vpop.f32.mrf.mxu1 }
 0x2ae   : > { %2129 = vmatpush.bf16.msrb.mxu3 %v2120_v39  ;;  %v1937_v46 = vadd.f32 %v1936_v3, %v1923_v43  ;;  %v4024_v3 = vld [vmem:[#allocation9 + $0xa8] sm:$0xf] }
 0x2b0   : > { %v1950_v47 = vadd.f32 %v4994_v19, %v1937_v46  ;;  %v4467_v46 = vld [vmem:[#allocation9 + $0xb0] sm:$0xf0] }
 0x2b2   : > { %v5025_v48 = vpack.c.bf16 %v1950_v47, %v1950_v47  ;;  %v4466_v47 = vld [vmem:[#allocation9 + $0xac] sm:$0xf] }
 0x2b4   : > { %v2240_v49 = vsel %vm1998_vm1, %v5025_v48, 0 }
 0x2b5   : > { %v1938_v50 = vpop.f32.mrf.mxu1 }
 0x2b6   : > { %v4026_v50 = vld [vmem:[#allocation9 + $0xb4] sm:$0xf0] }
 0x2ba   : > { %v2040_v15 = vpop.f32.mrf.mxu0  ;;  %3936 = vmatmul.msk.bf16.vlgmr.msrb.gmra.mxu0 %vm1961_vm0, %v2259_v41  ;;  %v2298_v41 = vunpack.c.l.b16 %v5025_v48 }
 0x2bb   : > { %v2044_v42 = vsel %vm4987_vm2, %v2040_v15, -inf }
 0x2bc   : > { %v2045_v44 = vsel %vm1982_vm3, %v2044_v42, -inf  ;;  %v2299_v15 = vpack.c.b16 %v2298_v41, %v2298_v41 }
 0x2bd   : > { %2046 = vmax.xlane.f32.xlu0 %v2045_v44  ;;  %3930 = vmatmul.msk.bf16.vlgmr.msra.gmra.mxu3 %vm1961_vm0, %v2081_v23 }
 0x2be   : > { %2249 = vmatpush.bf16.msra.mxu3 %v2240_v49  ;;  %v4025_v49 = vor.u32 %v4467_v46, %v4024_v3 }
 0x2c0   : > { %2827 = vmatpush.bf16.msra.mxu2 %v4025_v49 }
 0x2c2   : > { %v2042_v62 = vpop.f32.mrf.mxu0 }
 0x2c5   : > { %2225 = vmax.xlane.f32.xlu0 %v2224_v45 }
 0x327   : > { %v2160_v51 = vpop.f32.mrf.mxu0 }
 0x328   : > { %v2164_v34 = vsel %vm4987_vm2, %v2160_v51, -inf  ;;  %v4012_v51 = vld [vmem:[#allocation9 + $0x90] sm:$0xf] }
 0x329   : > { %v2165_v40 = vsel %vm1982_vm3, %v2164_v34, -inf }
 0x32a   : > { %2166 = vmax.xlane.f32.xlu1 %v2165_v40  ;;  %v4029_v40 = vor.u32 %v4466_v47, %v4026_v50 }
 0x32f   : > { %v2162_v52 = vpop.f32.mrf.mxu0 }
 0x330   : > { %v2047_v53 = vpop.xlane.xlu0 %2046  ;;  %v5032_v54 = vpop.f32.mrf.mxu3 }
 0x331   : > { %v2048_v55 = vsub.f32 %v2044_v42, %v2047_v53 }
 0x333   : > { %v2049_v19 = vmul.f32 1.442695, %v2048_v55 }
 0x335   : > { %4597 = vpow2.f32 %v2049_v19  ;;  %v4463_v19 = vld [vmem:[#allocation9 + $0x94] sm:$0xf] }
 0x337   : > { %v2280_v56 = vpop.f32.mrf.mxu0 }
 0x338   : > { %v2284_v57 = vsel %vm4987_vm2, %v2280_v56, -inf  ;;  %v2013_v58 = vpop.f32.mrf.mxu3  ;;  %v2226_v60 = vpop.xlane.xlu0 %2225  ;;  %v4014_v56 = vld [vmem:[#allocation9 + $0x9c] sm:$0xf0] }
 0x339   : > { %v2285_v59 = vsel %vm1982_vm3, %v2284_v57, -inf  ;;  %v2227_v11 = vsub.f32 %v2223_v7, %v2226_v60  ;;  %v4457_v60 = vld [vmem:[#allocation9 + $0x64] sm:$0xf] }
 0x33a   : > { %2286 = vmax.xlane.f32.xlu2 %v2285_v59  ;;  %v4000_v59 = vld [vmem:[#allocation9 + $0x78] sm:$0xf] }
 0x33b   : > { %v4598_v0 = vpop.eup %4597  ;;  %v2228_v12 = vmul.f32 1.442695, %v2227_v11  ;;  %v3990_v11 = vld [vmem:[#allocation9 + $0x6c] sm:$0xf0] }
 0x33c   : > { %v2051_v5 = vsel %vm1982_vm3, %v4598_v0, 0.0 }
 0x33d   : > { %4599 = vpow2.f32 %v2228_v12 }
 0x33f   : > { %v2282_v1 = vpop.f32.mrf.mxu0 }
 0x340   : > { %v2099_v2 = vpop.f32.mrf.mxu3  ;;  %v4017_v1 = vor.u32 %v4463_v19, %v4014_v56  ;;  %v4488_v19 = vld [vmem:[#allocation9 + $0x158] sm:$0xf0]  ;;  %v4487_v56 = vld [vmem:[#allocation9 + $0x154] sm:$0xf] }
 0x341   : > { %v2103_v4 = vsel %vm4987_vm2, %v2099_v2, -inf  ;;  %v4001_v2 = vor.u32 %v4461_v61, %v4000_v59  ;;  %v4096_v59 = vld [vmem:[#allocation9 + $0x138] sm:$0xf]  ;;  %v4485_v61 = vld [vmem:[#allocation9 + $0x140] sm:$0xf0] }
 0x342   : > { %2052 = vadd.xlane.f32.xlu2 %v2051_v5  ;;  %v2104_v6 = vsel %vm1982_vm3, %v2103_v4, -inf  ;;  %v3988_v5 = vld [vmem:[#allocation9 + $0x60] sm:$0xf] }
 0x343   : > { %2060 = vrot.lane.b32.xlu1 %v2059_v63, %s4785_s25  ;;  %2105 = vmax.xlane.f32.xlu0 %v2104_v6  ;;  %v5044_v13 = vpop.eup %4599  ;;  %v4460_v63 = vld [vmem:[#allocation9 + $0x7c] sm:$0xf]  ;;  %v4458_v6 = vld [vmem:[#allocation9 + $0x68] sm:$0xf0] }
 0x344   : > { %v2230_v14 = vsel %vm1982_vm3, %v5044_v13, 0.0 }
 0x348   : > { %v2101_v8 = vpop.f32.mrf.mxu3 }
 0x357   : > { %2180 = vrot.lane.b32.xlu0 %v2179_v10, %s4785_s25  ;;  %v3989_v10 = vor.u32 %v4458_v6, %v3988_v5  ;;  %v4084_v5 = vld [vmem:[#allocation9 + $0x120] sm:$0xf]  ;;  %v4482_v6 = vld [vmem:[#allocation9 + $0x128] sm:$0xf0] }
 0x381   : > { %2231 = vadd.xlane.f32.xlu0 %v2230_v14 }
 0x39d   : > { %v2167_v16 = vpop.xlane.xlu1 %2166 }
 0x39e   : > { %v2168_v17 = vsub.f32 %v2164_v34, %v2167_v16  ;;  %v4464_v34 = vld [vmem:[#allocation9 + $0x98] sm:$0xf0]  ;;  %v3976_v16 = vld [vmem:[#allocation9 + $0x48] sm:$0xf] }
 0x39f   : > { %v4013_v55 = vor.u32 %v4464_v34, %v4012_v51  ;;  %v4120_v51 = vld [vmem:[#allocation9 + $0x168] sm:$0xf]  ;;  %v4491_v34 = vld [vmem:[#allocation9 + $0x170] sm:$0xf0] }
 0x3a0   : > { %v2169_v18 = vmul.f32 1.442695, %v2168_v17  ;;  %v4455_v17 = vld [vmem:[#allocation9 + $0x50] sm:$0xf0] }
 0x3a1   : > { %2828 = vmatpush.bf16.msra.mxu2 %v4013_v55 }
 0x3a2   : > { %4601 = vpow2.f32 %v2169_v18 }
 0x3a5   : > { %2829 = vmatpush.bf16.msra.mxu2 %v4001_v2  ;;  %v4098_v2 = vld [vmem:[#allocation9 + $0x144] sm:$0xf0] }
 0x3a8   : > { %v4602_v21 = vpop.eup %4601 }
 0x3a9   : > { %v2171_v22 = vsel %vm1982_vm3, %v4602_v21, 0.0  ;;  %2830 = vmatpush.bf16.msra.mxu2 %v3989_v10  ;;  %v4128_v10 = vld [vmem:[#allocation9 + $0x170] sm:$0xf] }
 0x3aa   : > { %2172 = vadd.xlane.f32.xlu2 %v2171_v22  ;;  %v3993_v22 = vor.u32 %v4457_v60, %v3990_v11  ;;  %v4492_v60 = vld [vmem:[#allocation9 + $0x178] sm:$0xf0]  ;;  %v4086_v11 = vld [vmem:[#allocation9 + $0x12c] sm:$0xf0] }
 0x3ad   : > { %v2287_v23 = vpop.xlane.xlu2 %2286 }
 0x3ae   : > { %v2288_v24 = vsub.f32 %v2284_v57, %v2287_v23  ;;  %v3977_v23 = vor.u32 %v4455_v17, %v3976_v16  ;;  %v4515_v16 = vld [vmem:[#allocation9 + $0x230] sm:$0xf0] }
 0x3b0   : > { %v2289_v25 = vmul.f32 1.442695, %v2288_v24  ;;  %v4454_v24 = vld [vmem:[#allocation9 + $0x4c] sm:$0xf]  ;;  %2831 = vmatpush.bf16.msra.mxu2 %v3977_v23  ;;  %v4479_v23 = vld [vmem:[#allocation9 + $0x110] sm:$0xf0] }
 0x3b2   : > { %4603 = vpow2.f32 %v2289_v25  ;;  %v3978_v25 = vld [vmem:[#allocation9 + $0x54] sm:$0xf0] }
 0x3b5   : > { %v2061_v26 = vpop.permute.xlu1 %2060  ;;  %v2053_v27 = vpop.xlane.xlu2 %2052 }
 0x3b6   : > { %v2066_v28 = vsel %vm1998_vm1, %v2061_v26, 0  ;;  %4605 = vrcp.f32 %v2053_v27  ;;  %v2106_v29 = vpop.xlane.xlu0 %2105  ;;  %v3964_v26 = vld [vmem:[#allocation9 + $0x30] sm:$0xf]  ;;  %v4452_v27 = vld [vmem:[#allocation9 + $0x38] sm:$0xf0] }
 0x3b7   : > { %v2107_v30 = vsub.f32 %v2103_v4, %v2106_v29  ;;  %2075 = vmatpush.bf16.msrb.mxu1 %v2066_v28  ;;  %v4002_v4 = vld [vmem:[#allocation9 + $0x84] sm:$0xf0]  ;;  %v3981_v28 = vor.u32 %v4454_v24, %v3978_v25  ;;  %v3965_v29 = vor.u32 %v4452_v27, %v3964_v26  ;;  %v4489_v24 = vld [vmem:[#allocation9 + $0x160] sm:$0xf0]  ;;  %v4478_v26 = vld [vmem:[#allocation9 + $0x10c] sm:$0xf] }
 0x3b8   : > { %v4604_v31 = vpop.eup %4603  ;;  %v4005_v8 = vor.u32 %v4460_v63, %v4002_v4  ;;  %v4097_v4 = vor.u32 %v4485_v61, %v4096_v59  ;;  %v4469_v59 = vld [vmem:[#allocation9 + $0xc4] sm:$0xf] }
 0x3b9   : > { %v2108_v43 = vmul.f32 1.442695, %v2107_v30  ;;  %v2291_v32 = vsel %vm1982_vm3, %v4604_v31, 0.0  ;;  %v4451_v30 = vld [vmem:[#allocation9 + $0x34] sm:$0xf]  ;;  %2832 = vmatpush.bf16.msra.mxu2 %v3965_v29 }
 0x3ba   : > { %2292 = vadd.xlane.f32.xlu2 %v2291_v32  ;;  %v3952_v32 = vld [vmem:[#allocation9 + $0x18] sm:$0xf]  ;;  %v4512_v29 = vld [vmem:[#allocation9 + $0x218] sm:$0xf0] }
 0x3bb   : > { %4607 = vpow2.f32 %v2108_v43 }
 0x3bc   : > { %v4606_v33 = vpop.eup %4605 }
 0x3bd   : > { %v2055_v35 = vmul.f32 %v4606_v33, %v4598_v0  ;;  %v4449_v33 = vld [vmem:[#allocation9 + $0x20] sm:$0xf0] }
 0x3bf   : > { %v2056_v36 = vpack.c.bf16 %v2055_v35, %v2055_v35 }
 0x3c1   : > { %v4608_v37 = vpop.eup %4607  ;;  %3929 = vmatmul.msk.bf16.vlgmr.msrb.gmra.mxu1 %vm1982_vm3, %v2056_v36 }
 0x3c2   : > { %v2110_v38 = vsel %vm1982_vm3, %v4608_v37, 0.0 }
 0x3c3   : > { %2111 = vadd.xlane.f32.xlu1 %v2110_v38  ;;  %v4448_v38 = vld [vmem:[#allocation9 + $0x1c] sm:$0xf] }
 0x3c9   : > { %v2181_v20 = vpop.permute.xlu0 %2180 }
 0x3ca   : > { %v2186_v39 = vsel %vm1998_vm1, %v2181_v20, 0  ;;  %v3954_v20 = vld [vmem:[#allocation9 + $0x24] sm:$0xf0] }
 0x3cb   : > { %2195 = vmatpush.bf16.msra.mxu1 %v2186_v39  ;;  %v3957_v41 = vor.u32 %v4448_v38, %v3954_v20  ;;  %v4476_v38 = vld [vmem:[#allocation9 + $0xf8] sm:$0xf0] }
 0x3d2   : > { %2300 = vrot.lane.b32.xlu2 %v2299_v15, %s4785_s25 }
 0x3f4   : > { %v2232_v18 = vpop.xlane.xlu0 %2231 }
 0x41d   : > { %v2173_v42 = vpop.xlane.xlu2 %2172 }
 0x41e   : > { %4609 = vrcp.f32 %v2173_v42  ;;  %v3940_v42 = vld [vmem:[#allocation9] sm:$0xf] }
 0x424   : > { %v4610_v44 = vpop.eup %4609 }
 0x425   : > { %v2175_v7 = vmul.f32 %v4610_v44, %v4602_v21  ;;  %v4446_v44 = vld [vmem:[#allocation9 + $0x8] sm:$0xf0] }
 0x427   : > { %v2176_v62 = vpack.c.bf16 %v2175_v7, %v2175_v7  ;;  %v4445_v7 = vld [vmem:[#allocation9 + $0x4] sm:$0xf] }
 0x429   : > { %3933 = vmatmul.msk.bf16.vlgmr.msra.gmra.mxu1 %vm1982_vm3, %v2176_v62  ;;  %v3941_v62 = vor.u32 %v4446_v44, %v3940_v42  ;;  %v4092_v44 = vld [vmem:[#allocation9 + $0x128] sm:$0xf] }
 0x42d   : > { %v2293_v45 = vpop.xlane.xlu2 %2292 }
 0x42e   : > { %4611 = vrcp.f32 %v2293_v45  ;;  %v3942_v45 = vld [vmem:[#allocation9 + $0xc] sm:$0xf0] }
 0x42f   : > { %v3945_v3 = vor.u32 %v4445_v7, %v3942_v45  ;;  %v4483_v7 = vld [vmem:[#allocation9 + $0x130] sm:$0xf0]  ;;  %v4180_v45 = vld [vmem:[#allocation9 + $0x1e0] sm:$0xf] }
 0x434   : > { %v4612_v48 = vpop.eup %4611 }
 0x435   : > { %v2295_v52 = vmul.f32 %v4612_v48, %v4604_v31  ;;  %v2301_v53 = vpop.permute.xlu2 %2300  ;;  %v3966_v31 = vld [vmem:[#allocation9 + $0x3c] sm:$0xf0]  ;;  %v4490_v48 = vld [vmem:[#allocation9 + $0x16c] sm:$0xf] }
 0x436   : > { %v2306_v57 = vsel %vm1998_vm1, %v2301_v53, 0  ;;  %v2112_v58 = vpop.xlane.xlu1 %2111  ;;  %v3969_v35 = vor.u32 %v4451_v30, %v3966_v31  ;;  %v4074_v31 = vld [vmem:[#allocation9 + $0x114] sm:$0xf0] }
 0x437   : > { %v2296_v0 = vpack.c.bf16 %v2295_v52, %v2295_v52  ;;  %4613 = vrcp.f32 %v2112_v58  ;;  %2315 = vmatpush.bf16.msrb.mxu1 %v2306_v57  ;;  %v4122_v52 = vld [vmem:[#allocation9 + $0x174] sm:$0xf0]  ;;  %v4110_v58 = vld [vmem:[#allocation9 + $0x15c] sm:$0xf0] }
 0x438   : > { %4615 = vrcp.f32 %v2232_v18  ;;  %v4125_v55 = vor.u32 %v4490_v48, %v4122_v52  ;;  %v4116_v18 = vld [vmem:[#allocation9 + $0x158] sm:$0xf]  ;;  %v4480_v52 = vld [vmem:[#allocation9 + $0x118] sm:$0xf0] }
 0x439   : > { %v4117_v27 = vor.u32 %v4489_v24, %v4116_v18  ;;  %v4474_v18 = vld [vmem:[#allocation9 + $0xe8] sm:$0xf0]  ;;  %v4206_v24 = vld [vmem:[#allocation9 + $0x21c] sm:$0xf0] }
 0x43a   : > { %3937 = vmatmul.msk.bf16.vlgmr.msrb.gmra.mxu1 %vm1982_vm3, %v2296_v0  ;;  %v4113_v0 = vor.u32 %v4487_v56, %v4110_v58  ;;  %v4470_v58 = vld [vmem:[#allocation9 + $0xc8] sm:$0xf0] }
 0x43b   : > { %2866 = vmatpush.bf16.msra.mxu1 %v4029_v40  ;;  %v4121_v40 = vor.u32 %v4491_v34, %v4120_v51  ;;  %v4472_v34 = vld [vmem:[#allocation9 + $0xdc] sm:$0xf] }
 0x43d   : > { %v4614_v9 = vpop.eup %4613 }
 0x43e   : > { %v2114_v12 = vmul.f32 %v4614_v9, %v4608_v37  ;;  %v2077_v14 = vpop.f32.mrf.mxu1  ;;  %v4616_v36 = vpop.eup %4615  ;;  %v3953_v37 = vor.u32 %v4449_v33, %v3952_v32  ;;  %v4481_v9 = vld [vmem:[#allocation9 + $0x124] sm:$0xf]  ;;  %v4104_v32 = vld [vmem:[#allocation9 + $0x140] sm:$0xf]  ;;  %v4486_v33 = vld [vmem:[#allocation9 + $0x148] sm:$0xf0] }
 0x43f   : > { %2867 = vmatpush.bf16.msra.mxu1 %v4017_v1  ;;  %2322 = vrot.lane.b32.xlu2 %v2077_v14, %s4785_s25  ;;  %v2234_v39 = vmul.f32 %v4616_v36, %v5044_v13  ;;  %v4484_v1 = vld [vmem:[#allocation9 + $0x13c] sm:$0xf]  ;;  %v4216_v14 = vld [vmem:[#allocation9 + $0x228] sm:$0xf]  ;;  %v4089_v25 = vor.u32 %v4481_v9, %v4086_v11  ;;  %v4105_v20 = vor.u32 %v4486_v33, %v4104_v32  ;;  %v4200_v33 = vld [vmem:[#allocation9 + $0x200] sm:$0xf] }
 0x440   : > { %v2115_v21 = vpack.c.bf16 %v2114_v12, %v2114_v12  ;;  %2833 = vmatpush.bf16.msra.mxu2 %v3953_v37  ;;  %v4129_v12 = vor.u32 %v4492_v60, %v4128_v10  ;;  %v4217_v17 = vor.u32 %v4515_v16, %v4216_v14  ;;  %v4060_v37 = vld [vmem:[#allocation9 + $0xf0] sm:$0xf]  ;;  %v4516_v9 = vld [vmem:[#allocation9 + $0x238] sm:$0xf0]  ;;  %v4194_v32 = vld [vmem:[#allocation9 + $0x204] sm:$0xf0] }
 0x441   : > { %v2235_v15 = vpack.c.bf16 %v2234_v39, %v2234_v39  ;;  %v4509_v39 = vld [vmem:[#allocation9 + $0x200] sm:$0xf0]  ;;  %v4156_v10 = vld [vmem:[#allocation9 + $0x1b0] sm:$0xf]  ;;  %v4500_v60 = vld [vmem:[#allocation9 + $0x1b8] sm:$0xf0] }
 0x442   : > { %3931 = vmatmul.msk.bf16.vlgmr.msrb.gmra.mxu3 %vm1982_vm3, %v2115_v21  ;;  %v4085_v21 = vor.u32 %v4482_v6, %v4084_v5  ;;  %2853 = vmatpush.bf16.msra.mxu0 %v4217_v17  ;;  %v4514_v5 = vld [vmem:[#allocation9 + $0x22c] sm:$0xf]  ;;  %v4218_v6 = vld [vmem:[#allocation9 + $0x234] sm:$0xf0]  ;;  %v4056_v17 = vld [vmem:[#allocation9 + $0xe0] sm:$0xf] }
 0x443   : > { %2868 = vmatpush.bf16.msra.mxu1 %v4005_v8  ;;  %2840 = vmatpush.bf16.msrb.mxu3 %v4121_v40  ;;  %v4101_v8 = vor.u32 %v4484_v1, %v4098_v2  ;;  %v4080_v40 = vld [vmem:[#allocation9 + $0x110] sm:$0xf]  ;;  %v4221_v16 = vor.u32 %v4514_v5, %v4218_v6  ;;  %v4496_v5 = vld [vmem:[#allocation9 + $0x19c] sm:$0xf]  ;;  %v4146_v6 = vld [vmem:[#allocation9 + $0x1a4] sm:$0xf0] }
 0x444   : > { %2834 = vmatpush.bf16.msra.mxu2 %v3941_v62  ;;  %v4062_v62 = vld [vmem:[#allocation9 + $0xfc] sm:$0xf0]  ;;  %v4081_v61 = vor.u32 %v4480_v52, %v4080_v40  ;;  %v4038_v1 = vld [vmem:[#allocation9 + $0xcc] sm:$0xf0] }
 0x445   : > { %v4041_v14 = vor.u32 %v4469_v59, %v4038_v1  ;;  %v4032_v40 = vld [vmem:[#allocation9 + $0xb0] sm:$0xf]  ;;  %v4020_v59 = vld [vmem:[#allocation9 + $0x98] sm:$0xf] }
 0x446   : > { %v2079_v43 = vpop.f32.mrf.mxu1  ;;  %v4164_v1 = vld [vmem:[#allocation9 + $0x1b8] sm:$0xf] }
 0x447   : > { %2869 = vmatpush.bf16.msra.mxu1 %v3993_v22  ;;  %v4072_v22 = vld [vmem:[#allocation9 + $0x108] sm:$0xf] }
 0x448   : > { %2879 = vmatpush.bf16.msrb.mxu2 %v4125_v55  ;;  %v4073_v36 = vor.u32 %v4479_v23, %v4072_v22  ;;  %v4050_v55 = vld [vmem:[#allocation9 + $0xe4] sm:$0xf0]  ;;  %v4511_v23 = vld [vmem:[#allocation9 + $0x214] sm:$0xf] }
 0x44b   : > { %2870 = vmatpush.bf16.msra.mxu1 %v3981_v28  ;;  %v4204_v28 = vld [vmem:[#allocation9 + $0x210] sm:$0xf] }
 0x44c   : > { %2880 = vmatpush.bf16.msrb.mxu2 %v4113_v0  ;;  %v4205_v43 = vor.u32 %v4512_v29, %v4204_v28  ;;  %v4053_v0 = vor.u32 %v4472_v34, %v4050_v55  ;;  %v4057_v28 = vor.u32 %v4474_v18, %v4056_v17  ;;  %v4209_v29 = vor.u32 %v4511_v23, %v4206_v24  ;;  %v4502_v34 = vld [vmem:[#allocation9 + $0x1cc] sm:$0xf]  ;;  %v4176_v55 = vld [vmem:[#allocation9 + $0x1d0] sm:$0xf]  ;;  %v3996_v18 = vld [vmem:[#allocation9 + $0x68] sm:$0xf] }
 0x44d   : > { %v4134_v17 = vld [vmem:[#allocation9 + $0x18c] sm:$0xf0]  ;;  %v4459_v23 = vld [vmem:[#allocation9 + $0x70] sm:$0xf0]  ;;  %v4140_v24 = vld [vmem:[#allocation9 + $0x188] sm:$0xf] }
 0x44e   : > { %2854 = vmatpush.bf16.msra.mxu0 %v4205_v43  ;;  %v4508_v43 = vld [vmem:[#allocation9 + $0x1fc] sm:$0xf] }
 0x44f   : > { %2871 = vmatpush.bf16.msra.mxu1 %v3969_v35  ;;  %v4192_v35 = vld [vmem:[#allocation9 + $0x1f8] sm:$0xf] }
 0x450   : > { %2881 = vmatpush.bf16.msrb.mxu2 %v4101_v8  ;;  %v4193_v42 = vor.u32 %v4509_v39, %v4192_v35  ;;  %v4224_v8 = vld [vmem:[#allocation9 + $0x230] sm:$0xf]  ;;  %v4510_v35 = vld [vmem:[#allocation9 + $0x208] sm:$0xf0]  ;;  %v4497_v39 = vld [vmem:[#allocation9 + $0x1a0] sm:$0xf0] }
 0x451   : > { %v4225_v22 = vor.u32 %v4516_v9, %v4224_v8  ;;  %v4008_v8 = vld [vmem:[#allocation9 + $0x80] sm:$0xf]  ;;  %v4462_v9 = vld [vmem:[#allocation9 + $0x88] sm:$0xf0] }
 0x452   : > { %3935 = vmatmul.msk.bf16.vlgmr.msra.gmra.mxu3 %vm1982_vm3, %v2235_v15  ;;  %v4475_v15 = vld [vmem:[#allocation9 + $0xf4] sm:$0xf]  ;;  %2855 = vmatpush.bf16.msra.mxu0 %v4193_v42 }
 0x453   : > { %2872 = vmatpush.bf16.msra.mxu1 %v3957_v41  ;;  %v4077_v41 = vor.u32 %v4478_v26, %v4074_v31  ;;  %v4065_v51 = vor.u32 %v4475_v15, %v4062_v62  ;;  %v4212_v26 = vld [vmem:[#allocation9 + $0x218] sm:$0xf]  ;;  %v4471_v42 = vld [vmem:[#allocation9 + $0xd0] sm:$0xf0] }
 0x454   : > { %2882 = vmatpush.bf16.msrb.mxu2 %v4089_v25  ;;  %v4157_v25 = vor.u32 %v4500_v60, %v4156_v10  ;;  %v4152_v10 = vld [vmem:[#allocation9 + $0x1a0] sm:$0xf]  ;;  %v4498_v60 = vld [vmem:[#allocation9 + $0x1a8] sm:$0xf0] }
 0x457   : > { %2873 = vmatpush.bf16.msra.mxu1 %v3945_v3  ;;  %v4506_v3 = vld [vmem:[#allocation9 + $0x1e8] sm:$0xf0] }
 0x458   : > { %2883 = vmatpush.bf16.msrb.mxu2 %v4077_v41  ;;  %v4181_v48 = vor.u32 %v4506_v3, %v4180_v45  ;;  %v4044_v41 = vld [vmem:[#allocation9 + $0xc8] sm:$0xf] }
 0x459   : > { %v4045_v62 = vor.u32 %v4471_v42, %v4044_v41  ;;  %v4188_v3 = vld [vmem:[#allocation9 + $0x1e8] sm:$0xf] }
 0x45a   : > { %2856 = vmatpush.bf16.msra.mxu0 %v4181_v48  ;;  %v4170_v48 = vld [vmem:[#allocation9 + $0x1d4] sm:$0xf0] }
 0x45b   : > { %2918 = vmatpush.bf16.msrb.mxu1 %v4129_v12  ;;  %v4173_v52 = vor.u32 %v4502_v34, %v4170_v48 }
 0x45c   : > { %2884 = vmatpush.bf16.msrb.mxu2 %v4065_v51 }
 0x45f   : > { %2919 = vmatpush.bf16.msrb.mxu1 %v4117_v27  ;;  %v4513_v27 = vld [vmem:[#allocation9 + $0x220] sm:$0xf0] }
 0x460   : > { %2885 = vmatpush.bf16.msrb.mxu2 %v4053_v0  ;;  %v4213_v31 = vor.u32 %v4513_v27, %v4212_v26  ;;  %v4465_v0 = vld [vmem:[#allocation9 + $0xa0] sm:$0xf0]  ;;  %v3997_v26 = vor.u32 %v4459_v23, %v3996_v18 }
 0x463   : > { %2920 = vmatpush.bf16.msrb.mxu1 %v4105_v20  ;;  %v4144_v20 = vld [vmem:[#allocation9 + $0x198] sm:$0xf] }
 0x464   : > { %2886 = vmatpush.bf16.msrb.mxu2 %v4041_v14  ;;  %v4145_v15 = vor.u32 %v4497_v39, %v4144_v20  ;;  %v4153_v14 = vor.u32 %v4498_v60, %v4152_v10  ;;  %v3948_v20 = vld [vmem:[#allocation9 + $0x8] sm:$0xf]  ;;  %v4447_v39 = vld [vmem:[#allocation9 + $0x10] sm:$0xf0] }
 0x499   : > { %v2323_v46 = vpop.permute.xlu2 %2322 }
 0x49a   : > { %v2333_v47 = vsel %vm1961_vm0, %v5032_v54, %v2323_v46  ;;  %v4108_v54 = vld [vmem:[#allocation9 + $0x150] sm:$0xf]  ;;  %v4061_v46 = vor.u32 %v4476_v38, %v4060_v37  ;;  %v4201_v38 = vor.u32 %v4510_v35, %v4200_v33  ;;  %v3960_v35 = vld [vmem:[#allocation9 + $0x20] sm:$0xf] }
 0x49b   : > { %v5065_v13 = vpack.c.bf16 %v2333_v47, %v2333_v47  ;;  %v4109_v57 = vor.u32 %v4488_v19, %v4108_v54  ;;  %v4048_v47 = vld [vmem:[#allocation9 + $0xd8] sm:$0xf]  ;;  %v4168_v54 = vld [vmem:[#allocation9 + $0x1c8] sm:$0xf]  ;;  %v4503_v19 = vld [vmem:[#allocation9 + $0x1d0] sm:$0xf0] }
 0x49c   : > { %v4169_v2 = vor.u32 %v4503_v19, %v4168_v54  ;;  %v4504_v54 = vld [vmem:[#allocation9 + $0x1d8] sm:$0xf0] }
 0x49d   : > { %2835 = vmatmul.bf16.vlgmr.msra.gmra.mxu2 %v5065_v13  ;;  %2874 = vmatmul.bf16.vlgmr.msra.gmra.mxu1 %v5065_v13 }
 0x49e   : > { %2841 = vmatpush.bf16.msrb.mxu3 %v4109_v57  ;;  %v4036_v57 = vld [vmem:[#allocation9 + $0xc0] sm:$0xf]  ;;  %2857 = vmatpush.bf16.msra.mxu0 %v4169_v2  ;;  %v4501_v2 = vld [vmem:[#allocation9 + $0x1c0] sm:$0xf0] }
 0x49f   : > { %v4037_v11 = vor.u32 %v4470_v58, %v4036_v57  ;;  %2931 = vmatpush.bf16.msra.mxu2 %v4225_v22  ;;  %v4499_v57 = vld [vmem:[#allocation9 + $0x1b4] sm:$0xf]  ;;  %v4158_v58 = vld [vmem:[#allocation9 + $0x1bc] sm:$0xf0] }
 0x4a2   : > { %2842 = vmatpush.bf16.msrb.mxu3 %v4097_v4  ;;  %v4477_v4 = vld [vmem:[#allocation9 + $0x100] sm:$0xf0]  ;;  %2858 = vmatpush.bf16.msra.mxu0 %v4157_v25  ;;  %v4495_v25 = vld [vmem:[#allocation9 + $0x190] sm:$0xf0] }
 0x4a3   : > { %2932 = vmatpush.bf16.msra.mxu2 %v4213_v31  ;;  %v4141_v27 = vor.u32 %v4495_v25, %v4140_v24 }
 0x4a6   : > { %v2197_v49 = vpop.f32.mrf.mxu1  ;;  %2843 = vmatpush.bf16.msrb.mxu3 %v4085_v21  ;;  %2859 = vmatpush.bf16.msra.mxu0 %v4145_v15  ;;  %v3949_v15 = vor.u32 %v4447_v39, %v3948_v20 }
 0x4a7   : > { %2326 = vrot.lane.b32.xlu2 %v2197_v49, %s4785_s25  ;;  %v4473_v49 = vld [vmem:[#allocation9 + $0xe0] sm:$0xf0]  ;;  %2933 = vmatpush.bf16.msra.mxu2 %v4201_v38 }
 0x4a8   : > { %v4049_v56 = vor.u32 %v4473_v49, %v4048_v47  ;;  %v4132_v49 = vld [vmem:[#allocation9 + $0x180] sm:$0xf] }
 0x4aa   : > { %2844 = vmatpush.bf16.msrb.mxu3 %v4073_v36  ;;  %v4197_v36 = vor.u32 %v4508_v43, %v4194_v32  ;;  %v3972_v43 = vld [vmem:[#allocation9 + $0x38] sm:$0xf]  ;;  %v4453_v32 = vld [vmem:[#allocation9 + $0x40] sm:$0xf0] }
 0x4ab   : > { %v3973_v33 = vor.u32 %v4453_v32, %v3972_v43 }
 0x4ae   : > { %v2199_v50 = vpop.f32.mrf.mxu1  ;;  %2845 = vmatpush.bf16.msrb.mxu3 %v4061_v46  ;;  %v4507_v46 = vld [vmem:[#allocation9 + $0x1f0] sm:$0xf0] }
 0x4af   : > { %v4093_v50 = vor.u32 %v4483_v7, %v4092_v44  ;;  %v4505_v44 = vld [vmem:[#allocation9 + $0x1e4] sm:$0xf]  ;;  %v4182_v7 = vld [vmem:[#allocation9 + $0x1ec] sm:$0xf0]  ;;  %v4189_v47 = vor.u32 %v4507_v46, %v4188_v3 }
 0x4b0   : > { %v4185_v45 = vor.u32 %v4505_v44, %v4182_v7 }
 0x4b1   : > { %2921 = vmatpush.bf16.msrb.mxu1 %v4093_v50  ;;  %v4494_v50 = vld [vmem:[#allocation9 + $0x188] sm:$0xf0]  ;;  %2934 = vmatpush.bf16.msra.mxu2 %v4189_v47 }
 0x4b2   : > { %2846 = vmatpush.bf16.msrb.mxu3 %v4049_v56  ;;  %v4133_v51 = vor.u32 %v4494_v50, %v4132_v49  ;;  %v4177_v56 = vor.u32 %v4504_v54, %v4176_v55 }
 0x4b4   : > { %2860 = vmatpush.bf16.msra.mxu0 %v4133_v51  ;;  %v2435_v51 = vld [vmem:[%s5122_s4] sm:$0x7] }
 0x4b5   : > { %2922 = vmatpush.bf16.msrb.mxu1 %v4081_v61  ;;  %v4161_v61 = vor.u32 %v4499_v57, %v4158_v58  ;;  %2935 = vmatpush.bf16.msra.mxu2 %v4177_v56 }
 0x4b6   : > { %2847 = vmatpush.bf16.msrb.mxu3 %v4037_v11  ;;  %v4149_v11 = vor.u32 %v4496_v5, %v4146_v6 }
 0x4b7   : > { %v2317_v53 = vpop.f32.mrf.mxu1 }
 0x4b8   : > { %2330 = vrot.lane.b32.xlu2 %v2317_v53, %s4785_s25 }
 0x4ba   : > { %2892 = vmatpush.bf16.msra.mxu3 %v4221_v16  ;;  %v4493_v16 = vld [vmem:[#allocation9 + $0x184] sm:$0xf] }
 0x4bb   : > { %v4137_v22 = vor.u32 %v4493_v16, %v4134_v17 }
 0x4be   : > { %2893 = vmatpush.bf16.msra.mxu3 %v4209_v29  ;;  %v4456_v29 = vld [vmem:[#allocation9 + $0x58] sm:$0xf0] }
 0x4bf   : > { %v2319_v63 = vpop.f32.mrf.mxu1 }
 0x4c0   : > { %v4068_v63 = vld [vmem:[#allocation9 + $0xf8] sm:$0xf] }
 0x4c1   : > { %v4069_v12 = vor.u32 %v4477_v4, %v4068_v63  ;;  %v4021_v63 = vor.u32 %v4465_v0, %v4020_v59  ;;  %v4165_v4 = vor.u32 %v4501_v2, %v4164_v1  ;;  %v2439_v0 = vperm.slane %v2435_v51, 2 }
 0x4c2   : > { %2894 = vmatpush.bf16.msra.mxu3 %v4197_v36  ;;  %v4450_v36 = vld [vmem:[#allocation9 + $0x28] sm:$0xf0] }
 0x4c3   : > { %2923 = vmatpush.bf16.msrb.mxu1 %v4069_v12  ;;  %2936 = vmatpush.bf16.msra.mxu2 %v4165_v4  ;;  %v4009_v12 = vor.u32 %v4462_v9, %v4008_v8 }
 0x4c5   : > { %v5071_v30 = vpop.f32.mrf.mxu3 }
 0x4c6   : > { %2895 = vmatpush.bf16.msra.mxu3 %v4185_v45 }
 0x4c7   : > { %2924 = vmatpush.bf16.msrb.mxu1 %v4057_v28  ;;  %2937 = vmatpush.bf16.msra.mxu2 %v4153_v14  ;;  %v3984_v28 = vld [vmem:[#allocation9 + $0x50] sm:$0xf] }
 0x4c8   : > { %v3985_v31 = vor.u32 %v4456_v29, %v3984_v28 }
 0x4ca   : > { %2896 = vmatpush.bf16.msra.mxu3 %v4173_v52 }
 0x4cb   : > { %2925 = vmatpush.bf16.msrb.mxu1 %v4045_v62  ;;  %2938 = vmatpush.bf16.msra.mxu2 %v4141_v27 }
 0x4cd   : > { %v2133_v53 = vpop.f32.mrf.mxu3 }
 0x4ce   : > { %v4468_v53 = vld [vmem:[#allocation9 + $0xb8] sm:$0xf0]  ;;  %2897 = vmatpush.bf16.msra.mxu3 %v4161_v61 }
 0x4cf   : > { %v4033_v19 = vor.u32 %v4468_v53, %v4032_v40  ;;  %v2438_v53 = vperm.slane %v2435_v51, 1 }
 0x4d1   : > { %2905 = vmatpush.bf16.msrb.mxu0 %v4033_v19 }
 0x4d2   : > { %2898 = vmatpush.bf16.msra.mxu3 %v4149_v11 }
 0x4d5   : > { %v5073_v21 = vpop.f32.mrf.mxu3  ;;  %2906 = vmatpush.bf16.msrb.mxu0 %v4021_v63 }
 0x4d6   : > { %2899 = vmatpush.bf16.msra.mxu3 %v4137_v22 }
 0x4d9   : > { %2907 = vmatpush.bf16.msrb.mxu0 %v4009_v12 }
 0x4dd   : > { %v2253_v37 = vpop.f32.mrf.mxu3  ;;  %2908 = vmatpush.bf16.msrb.mxu0 %v3997_v26 }
 0x4de   : > { %v3961_v37 = vor.u32 %v4450_v36, %v3960_v35 }
 0x4e1   : > { %2909 = vmatpush.bf16.msrb.mxu0 %v3985_v31 }
 0x4e5   : > { %2910 = vmatpush.bf16.msrb.mxu0 %v3973_v33 }
 0x4e9   : > { %2911 = vmatpush.bf16.msrb.mxu0 %v3961_v37 }
 0x4ed   : > { %2912 = vmatpush.bf16.msrb.mxu0 %v3949_v15 }
 0x501   : > { %v2327_v38 = vpop.permute.xlu2 %2326 }
 0x502   : > { %v2334_v41 = vsel %vm1961_vm0, %v5071_v30, %v2327_v38 }
 0x503   : > { %v2337_v42 = vpack.c.bf16 %v2334_v41, %v2334_v41 }
 0x505   : > { %2848 = vmatmul.bf16.vlgmr.msrb.gmra.mxu3 %v2337_v42  ;;  %2887 = vmatmul.bf16.vlgmr.msrb.gmra.mxu2 %v2337_v42 }
 0x506   : > { %2926 = vmatmul.bf16.vlgmr.msrb.gmra.mxu1 %v2337_v42 }
 0x512   : > { %v2331_v44 = vpop.permute.xlu2 %2330 }
 0x513   : > { %v2335_v7 = vsel %vm1961_vm0, %v5073_v21, %v2331_v44  ;;  %v2437_v21 = vperm.slane %v2435_v51, 0 }
 0x514   : > { %v2338_v62 = vpack.c.bf16 %v2335_v7, %v2335_v7 }
 0x516   : > { %2861 = vmatmul.bf16.vlgmr.msra.gmra.mxu0 %v2338_v62  ;;  %2900 = vmatmul.bf16.vlgmr.msra.gmra.mxu3 %v2338_v62 }
 0x517   : > { %2939 = vmatmul.bf16.vlgmr.msra.gmra.mxu2 %v2338_v62 }
 0x51a   : > { %v2875_v45 = vpop.f32.mrf.mxu1 }
 0x520   : > { %v2836_v3 = vpop.f32.mrf.mxu2 }
 0x521   : > { %v2837_v48 = vadd.f32 %v2836_v3, %v2437_v21 }
 0x522   : > { %v2877_v46 = vpop.f32.mrf.mxu1 }
 0x526   : > { %2913 = vmatmul.bf16.vlgmr.msrb.gmra.mxu0 %v5065_v13  ;;  %v2876_v13 = vadd.f32 %v2875_v45, %v2438_v53 }
 0x528   : > { %v2838_v30 = vpop.f32.mrf.mxu2 }
 0x583   : > { %v2927_v47 = vpop.f32.mrf.mxu1 }
 0x588   : > { %v2849_v49 = vpop.f32.mrf.mxu3  ;;  %v2888_v50 = vpop.f32.mrf.mxu2 }
 0x589   : > { %v2850_v55 = vadd.f32 %v2849_v49, %v2837_v48  ;;  %v2889_v56 = vadd.f32 %v2888_v50, %v2876_v13 }
 0x58b   : > { %v2929_v34 = vpop.f32.mrf.mxu1 }
 0x590   : > { %v2851_v40 = vpop.f32.mrf.mxu3  ;;  %v2890_v52 = vpop.f32.mrf.mxu2 }
 0x593   : > { %v2862_v54 = vpop.f32.mrf.mxu0 }
 0x594   : > { %v2863_v19 = vadd.f32 %v2862_v54, %v2850_v55 }
 0x596   : > { %2944 = vst [vmem:[%s250_s8] sm:$0xff] %v2863_v19 }
 0x599   : > { %v2901_v57 = vpop.f32.mrf.mxu3 }
 0x59a   : > { %v2902_v58 = vadd.f32 %v2901_v57, %v2889_v56  ;;  %v2940_v59 = vpop.f32.mrf.mxu2 }
 0x59b   : > { %v2864_v61 = vpop.f32.mrf.mxu0 }
 0x59c   : > { %2945 = vst [vmem:[%s250_s8 + $0x8] sm:$0xff] %v2902_v58 }
 0x5a1   : > { %v2903_v1 = vpop.f32.mrf.mxu3 }
 0x5a2   : > { %v2942_v2 = vpop.f32.mrf.mxu2 }
 0x5a3   : > { %v2914_v63 = vpop.f32.mrf.mxu0 }
 0x5a4   : > { %v2915_v4 = vadd.f32 %v2914_v63, %v2439_v0 }
 0x5a6   : > { %v2928_v5 = vadd.f32 %v2927_v47, %v2915_v4 }
 0x5a8   : > { %v2941_v6 = vadd.f32 %v2940_v59, %v2928_v5 }
 0x5aa   : > { %2946 = vst [vmem:[%s250_s8 + $0x10] sm:$0xff] %v2941_v6 }
 0x5ab   : > { %v2916_v8 = vpop.f32.mrf.mxu0 }
 0x5ac   : > { %4734 = shalt.err (!%p4731_p9)
}
 0x5ad   : > { %4531 = dma.vmem_to_hbm [thread:$0]  (%p4881_p4), %s2962_s14, 384, %s2964_s15, %s2948_s29  }
 0x5ae PF: > { %s2975_s21 = sand.u32 1, %s4765_s0   ;;  %p5131_p10 = scmp.ge.s32.totalorder %s4777_s20, 2 }
 0x5af   : > { %s2976_s17 = scalar_lea.sflag [#allocation6], %s2975_s21 }
 0x5b0   : > { %p4545_p11 = pnand %p5131_p10, %p4885_p6 }
 0x5b2   : > { %p4546_p13 = pneg %p4545_p11 }
 0x5b4   : > { %4760 = dma.done.wait (%p4546_p13), %s2976_s17, 384  }
 0x5b5   : > { %4762 = vsyncadd (%p4546_p13), %s2976_s17, 4294966912  ;;  %p20_p0 = scmp.ge.s32.totalorder %s4859_s13, 4   ;;  %s5132_s0 = smov %s4769_s18 }
 0x5b6   : > { %s5133_s18 = smov %s4773_s19  ;;  %s5134_s19 = smov %s4870_s16 }
 0x5b7   : > { %s5135_s20 = smov %s4859_s13  ;;  %22 = sbr.rel (!%p20_p0) target bundleno = 6 (0x6), region = 89 }
 0x5bc   :  { %2982 = vsyncpa [#allocation5], 1 }
 0x5bd   :  { %2984 = vsyncpa [#allocation5 + $0x1], 1 }
 0x5be   :  { %2985 = vsyncpa [#allocation8], 1 }
 0x5bf   :  { %2986 = vsyncpa [#allocation6], 1 }
 0x5c0   :  { %2988 = vsyncpa [#allocation6 + $0x1], 1 }

</bundles_post_ra>
